<compile_context>
chip_gen: v6e
topology: v6e:2x2x1
jax: 0.10.0
libtpu: 0.0.40
codegen_flags: <defaults>
</compile_context>

<pallas_src>
import functools
import math

import jax
import jax.numpy as jnp
from jax.experimental import pallas as pl
from jax.experimental.pallas import tpu as pltpu


# ------------------------------------------------------------------
# Exact (erf-based) GELU, Mosaic-safe
# ------------------------------------------------------------------
_SQRT1_2 = 1.0 / math.sqrt(2.0)
_ERF_P = 0.3275911
_ERF_A1, _ERF_A2, _ERF_A3, _ERF_A4, _ERF_A5 = (
    0.254829592, -0.284496736, 1.421413741, -1.453152027, 1.061405429)


def _erf_poly(x):
    # TODO(synk): lax.erf has no guaranteed Mosaic lowering; Abramowitz & Stegun
    # 7.1.26 polynomial (max abs error 1.5e-7) stands in for it inside the kernel.
    ax = jnp.abs(x)
    t = 1.0 / (1.0 + _ERF_P * ax)
    poly = ((((_ERF_A5 * t + _ERF_A4) * t + _ERF_A3) * t + _ERF_A2) * t + _ERF_A1) * t
    y = 1.0 - poly * jnp.exp(-(ax * ax))
    return jnp.where(x < 0.0, -y, y)


def _gelu_exact(x):
    # Matches F.gelu / jax.nn.gelu(approximate=False) to ~1e-7.
    return 0.5 * x * (1.0 + _erf_poly(x * _SQRT1_2))


# ------------------------------------------------------------------
# Kernel: one batch block, all heads, fused epilogue
# ------------------------------------------------------------------
def _cma_kernel(rgb_ref, flow_ref, rproj_ref, fproj_ref, atte_ref,
                frgb_ref, fflow_ref, *, num_head, compute_dtype):
    nb, l, d = rgb_ref.shape
    dh = d // num_head
    aligned = (dh % 128 == 0) or (num_head == 1)

    # Residuals kept in f32 for the fused epilogue.
    rgb_res = rgb_ref[...]                      # (nb, l, d) f32
    flow_res = flow_ref[...]                    # (nb, l, d) f32

    # Stack batch items into the M dimension of the projection matmuls.
    rgb_m = rgb_res.reshape(nb * l, d).astype(compute_dtype)
    flow_m = flow_res.reshape(nb * l, d).astype(compute_dtype)

    def l2norm(v):
        # F.normalize(..., dim=-1, eps=1e-12); rsqrt runs on the EUP slot.
        ss = jnp.sum(v * v, axis=-1, keepdims=True)
        return v * jax.lax.rsqrt(jnp.maximum(ss, 1e-24))

    if aligned:
        rgb_slabs = [[None] * num_head for _ in range(nb)]
        flow_slabs = [[None] * num_head for _ in range(nb)]
    else:
        rgb_merged = [jnp.zeros((l, d), jnp.float32) for _ in range(nb)]
        flow_merged = [jnp.zeros((l, d), jnp.float32) for _ in range(nb)]

    for h in range(num_head):
        rp = rproj_ref[h]                       # (d, dh)  compute_dtype
        fp = fproj_ref[h]                       # (d, dh)
        att = atte_ref[h]                       # (dh, dh)

        o_rgb = l2norm(jnp.dot(rgb_m, rp, preferred_element_type=jnp.float32))
        o_flow = l2norm(jnp.dot(flow_m, fp, preferred_element_type=jnp.float32))
        o_rgb_c = o_rgb.astype(compute_dtype)   # (nb*l, dh)
        o_flow_c = o_flow.astype(compute_dtype)

        tmp_c = jnp.dot(o_rgb_c, att,
                        preferred_element_type=jnp.float32).astype(compute_dtype)

        if not aligned:
            # Lane-alignment-safe merge: a 0/1 selector places this head's (l, dh)
            # slab into merged columns [h*dh, (h+1)*dh) via an MXU matmul, avoiding
            # an unaligned minor-dim concatenate when dh % 128 != 0.
            col = jax.lax.broadcasted_iota(jnp.int32, (dh, d), 1)
            row = jax.lax.broadcasted_iota(jnp.int32, (dh, d), 0)
            sel = (col == row + h * dh).astype(jnp.float32)

        for b in range(nb):
            sl = slice(b * l, (b + 1) * l)
            # a[i, j] = <o_rgb[i] @ atte, o_flow[j]> : contract last dims directly,
            # no materialised o_flow.T.
            a = jax.lax.dot_general(
                tmp_c[sl], o_flow_c[sl],
                dimension_numbers=(((1,), (1,)), ((), ())),
                preferred_element_type=jnp.float32)               # (l, l)

            # Row softmax + e_rgb first so a/e_row/p_row can die before the column
            # pass (lower peak (l, l) residency).
            e_row = jnp.exp(a - jnp.max(a, axis=-1, keepdims=True))
            p_row = e_row * pl.reciprocal(jnp.sum(e_row, axis=-1, keepdims=True),
                                          approx=True)
            e_rgb = jnp.dot(p_row.astype(compute_dtype), o_rgb_c[sl],
                            preferred_element_type=jnp.float32)   # (l, dh)

            # Column softmax: softmax(a.T, -1) == softmax over axis 0 of a.
            e_col = jnp.exp(a - jnp.max(a, axis=0, keepdims=True))
            p_col = e_col * pl.reciprocal(jnp.sum(e_col, axis=0, keepdims=True),
                                          approx=True)
            # e_flow[i, k] = sum_j p_col[j, i] * o_flow[j, k] (contract a's axis 0).
            e_flow = jax.lax.dot_general(
                p_col.astype(compute_dtype), o_flow_c[sl],
                dimension_numbers=(((0,), (0,)), ((), ())),
                preferred_element_type=jnp.float32)               # (l, dh)

            if aligned:
                rgb_slabs[b][h] = e_rgb
                flow_slabs[b][h] = e_flow
            else:
                rgb_merged[b] = rgb_merged[b] + jnp.dot(
                    e_rgb, sel, preferred_element_type=jnp.float32)
                flow_merged[b] = flow_merged[b] + jnp.dot(
                    e_flow, sel, preferred_element_type=jnp.float32)

    for b in range(nb):
        if aligned:
            if num_head == 1:
                e_rgb_full, e_flow_full = rgb_slabs[b][0], flow_slabs[b][0]
            else:
                e_rgb_full = jnp.concatenate(rgb_slabs[b], axis=-1)    # (l, d)
                e_flow_full = jnp.concatenate(flow_slabs[b], axis=-1)
        else:
            e_rgb_full, e_flow_full = rgb_merged[b], flow_merged[b]
        # Fused epilogue: exact GELU + residual + tanh, one lane-dense (l, d) store.
        frgb_ref[b] = jnp.tanh(_gelu_exact(e_rgb_full) + rgb_res[b]).astype(frgb_ref.dtype)
        fflow_ref[b] = jnp.tanh(_gelu_exact(e_flow_full) + flow_res[b]).astype(fflow_ref.dtype)


# ------------------------------------------------------------------
# pallas_call wrapper: full CMA.forward
# ------------------------------------------------------------------
def cma_forward(rgb, flow, rgb_proj, flow_proj, atte,
                *, compute_dtype=jnp.bfloat16, batch_block=None,
                vmem_limit_bytes=None):
    """CMA.forward: returns (f_rgb, f_flow), each (N, L, D) float32."""
    n, l, d = rgb.shape
    nh, d2, dh = rgb_proj.shape
    assert d2 == d and nh * dh == d, (rgb_proj.shape, rgb.shape)
    assert flow.shape == rgb.shape
    assert flow_proj.shape == rgb_proj.shape
    assert atte.shape == (nh, dh, dh)

    # Weights are pure MXU operands -> cast once in HBM (halves weight DMA in bf16).
    w_cast = lambda x: x.astype(compute_dtype)
    rgb_proj_c, flow_proj_c, atte_c = w_cast(rgb_proj), w_cast(flow_proj), w_cast(atte)
    # Activations stay f32 in HBM: they feed the fused residual at full precision;
    # the kernel casts the matmul operands internally.
    rgb32 = rgb.astype(jnp.float32)
    flow32 = flow.astype(jnp.float32)

    if batch_block is None:
        # Fill MXU rows when L is small by stacking batch items; cap unrolling at 8.
        limit = min(n, max(1, 128 // l)) if l < 128 else 1
        limit = max(1, min(limit, 8))
        batch_block = 1
        for cand in range(limit, 0, -1):
            if n % cand == 0:
                batch_block = cand
                break
    assert n % batch_block == 0, (n, batch_block)
    grid = (n // batch_block,)

    if vmem_limit_bytes is None:
        # Raise the scoped-VMEM cap above the 16/32 MiB defaults (full-size blocks,
        # deep pipelining) while staying under v7x's 64 MiB physical VMEM.
        try:
            cap = pltpu.get_tpu_info().vmem_capacity_bytes
            vmem_limit_bytes = max(32 << 20, min(cap - (8 << 20), 100 << 20))
        except Exception:
            vmem_limit_bytes = 48 << 20

    out_shape = (jax.ShapeDtypeStruct((n, l, d), jnp.float32),
                 jax.ShapeDtypeStruct((n, l, d), jnp.float32))

    kernel = functools.partial(_cma_kernel, num_head=nh, compute_dtype=compute_dtype)
    f_rgb, f_flow = pl.pallas_call(
        kernel,
        out_shape=out_shape,
        grid_spec=pltpu.PrefetchScalarGridSpec(
            num_scalar_prefetch=0,
            grid=grid,
            in_specs=[
                pl.BlockSpec((batch_block, l, d), lambda i: (i, 0, 0)),   # rgb
                pl.BlockSpec((batch_block, l, d), lambda i: (i, 0, 0)),   # flow
                # Whole-array, constant-index weight blocks: DMA'd once, VMEM-resident.
                pl.BlockSpec((nh, d, dh), lambda i: (0, 0, 0)),           # rgb_proj
                pl.BlockSpec((nh, d, dh), lambda i: (0, 0, 0)),           # flow_proj
                pl.BlockSpec((nh, dh, dh), lambda i: (0, 0, 0)),          # atte
            ],
            out_specs=(
                pl.BlockSpec((batch_block, l, d), lambda i: (i, 0, 0)),   # f_rgb
                pl.BlockSpec((batch_block, l, d), lambda i: (i, 0, 0)),   # f_flow
            ),
        ),
        compiler_params=pltpu.CompilerParams(
            dimension_semantics=("parallel",),
            vmem_limit_bytes=int(vmem_limit_bytes)),
    )(rgb32, flow32, rgb_proj_c, flow_proj_c, atte_c)
    return f_rgb, f_flow


# ------------------------------------------------------------------
# Pure-JAX reference (independent transcription of the PyTorch forward)
# ------------------------------------------------------------------
def cma_reference(rgb, flow, rgb_proj, flow_proj, atte):
    n, l, d = rgb.shape
    hp = jax.lax.Precision.HIGHEST

    def l2norm(v):
        nrm = jnp.sqrt(jnp.sum(v * v, axis=-1, keepdims=True))
        return v / jnp.maximum(nrm, 1e-12)

    o_rgb = l2norm(jnp.einsum("nld,hdk->nhlk", rgb, rgb_proj, precision=hp))
    o_flow = l2norm(jnp.einsum("nld,hdk->nhlk", flow, flow_proj, precision=hp))
    a = jnp.einsum("nhlk,hkm->nhlm", o_rgb, atte, precision=hp)
    a = jnp.einsum("nhlk,nhmk->nhlm", a, o_flow, precision=hp)
    rgb_atte = jax.nn.softmax(a, axis=-1)
    flow_atte = jax.nn.softmax(jnp.swapaxes(a, -1, -2), axis=-1)
    e_rgb = jax.nn.gelu(
        jnp.einsum("nhlm,nhmk->nhlk", rgb_atte, o_rgb, precision=hp),
        approximate=False)
    e_flow = jax.nn.gelu(
        jnp.einsum("nhlm,nhmk->nhlk", flow_atte, o_flow, precision=hp),
        approximate=False)
    f_rgb = jnp.tanh(jnp.transpose(e_rgb, (0, 2, 1, 3)).reshape(n, l, d) + rgb)
    f_flow = jnp.tanh(jnp.transpose(e_flow, (0, 2, 1, 3)).reshape(n, l, d) + flow)
    return f_rgb, f_flow


# ------------------------------------------------------------------
# Deterministic parameter construction
# ------------------------------------------------------------------
def init_cma_params(key, feat_dim, num_head, *, atte_scale=1.0):
    """Parameter tensors with the PyTorch module's shapes.

    The PyTorch module inits the projections with U(+/-sqrt(feat_dim)) (the scale is
    irrelevant after the L2-normalize, so we keep it) and `atte` with U(+/-sqrt(dh)).
    For the numeric check we use an O(1) scale for `atte` so the softmax logits stay
    O(1) and the comparison is not dominated by matmul-precision rounding modes.
    """
    dh = feat_dim // num_head
    k1, k2, k3 = jax.random.split(key, 3)
    s = math.sqrt(feat_dim)
    return dict(
        rgb_proj=jax.random.uniform(k1, (num_head, feat_dim, dh), jnp.float32, -s, s),
        flow_proj=jax.random.uniform(k2, (num_head, feat_dim, dh), jnp.float32, -s, s),
        atte=jax.random.uniform(k3, (num_head, dh, dh), jnp.float32,
                                -atte_scale, atte_scale),
    )


if __name__ == "__main__":
    key = jax.random.PRNGKey(0)
    k_rgb, k_flow, k_p1, k_p2 = jax.random.split(key, 4)

    # Small shapes: batch=2, seq=16, feat_dim=256, num_head=2 -> DH=128.
    N, L, FEAT_DIM, NUM_HEAD = 2, 16, 256, 2
    rgb = jax.random.normal(k_rgb, (N, L, FEAT_DIM), jnp.float32)
    flow = jax.random.normal(k_flow, (N, L, FEAT_DIM), jnp.float32)
    p = init_cma_params(k_p1, FEAT_DIM, NUM_HEAD)

    ref_rgb, ref_flow = cma_reference(rgb, flow, p["rgb_proj"], p["flow_proj"], p["atte"])

    # Default path: bf16 MXU operands, f32 accumulation, fused epilogue.
    f_rgb, f_flow = jax.block_until_ready(
        cma_forward(rgb, flow, p["rgb_proj"], p["flow_proj"], p["atte"]))
    assert f_rgb.shape == ref_rgb.shape and f_flow.shape == ref_flow.shape
    err_bf = max(float(jnp.max(jnp.abs(f_rgb - ref_rgb))),
                 float(jnp.max(jnp.abs(f_flow - ref_flow))))
    assert err_bf < 5e-2, f"bf16 path mismatch vs reference: max abs err = {err_bf}"

    # f32 MXU-operand path (tighter parity with the PyTorch forward).
    f_rgb32, f_flow32 = jax.block_until_ready(
        cma_forward(rgb, flow, p["rgb_proj"], p["flow_proj"], p["atte"],
                    compute_dtype=jnp.float32))
    err_32 = max(float(jnp.max(jnp.abs(f_rgb32 - ref_rgb))),
                 float(jnp.max(jnp.abs(f_flow32 - ref_flow))))
    assert err_32 < 1e-2, f"f32 path mismatch vs reference: max abs err = {err_32}"

    # Non-lane-aligned head size (DH=64): exercises the selector-matmul merge path.
    p4 = init_cma_params(k_p2, FEAT_DIM, 4)
    ref4 = cma_reference(rgb, flow, p4["rgb_proj"], p4["flow_proj"], p4["atte"])
    out4 = jax.block_until_ready(
        cma_forward(rgb, flow, p4["rgb_proj"], p4["flow_proj"], p4["atte"],
                    compute_dtype=jnp.float32))
    err_4 = max(float(jnp.max(jnp.abs(out4[0] - ref4[0]))),
                float(jnp.max(jnp.abs(out4[1] - ref4[1]))))
    assert err_4 < 1e-2, f"4-head merge path mismatch vs reference: max abs err = {err_4}"

    print("KERNEL_OK")
</pallas_src>

<mosaic_0001>
module attributes {stable_mosaic.version = 11 : i64} {
  func.func @_cma_kernel(%arg0: i32, %arg1: memref<2x16x256xf32, #tpu.memory_space<vmem>>, %arg2: memref<2x16x256xf32, #tpu.memory_space<vmem>>, %arg3: memref<2x256x128xbf16, #tpu.memory_space<vmem>>, %arg4: memref<2x256x128xbf16, #tpu.memory_space<vmem>>, %arg5: memref<2x128x128xbf16, #tpu.memory_space<vmem>>, %arg6: memref<2x16x256xf32, #tpu.memory_space<vmem>>, %arg7: memref<2x16x256xf32, #tpu.memory_space<vmem>>) attributes {dimension_semantics = [#tpu.dimension_semantics<parallel>], iteration_bounds = array<i64: 1>, scalar_prefetch = 0 : i64, scratch_operands = 0 : i64, tpu.core_type = #tpu.core_type<tc>, window_params = [{transform_indices = @transform_0, window_bounds = array<i64: 2, 16, 256>}, {transform_indices = @transform_1, window_bounds = array<i64: 2, 16, 256>}, {pipeline_mode = #tpu.pipeline_mode<synchronous>, transform_indices = @transform_2, window_bounds = array<i64: 2, 256, 128>}, {pipeline_mode = #tpu.pipeline_mode<synchronous>, transform_indices = @transform_3, window_bounds = array<i64: 2, 256, 128>}, {pipeline_mode = #tpu.pipeline_mode<synchronous>, transform_indices = @transform_4, window_bounds = array<i64: 2, 128, 128>}, {transform_indices = @transform_5, window_bounds = array<i64: 2, 16, 256>}, {transform_indices = @transform_6, window_bounds = array<i64: 2, 16, 256>}]} {
    %c0 = arith.constant 0 : index
    %c0_0 = arith.constant 0 : index
    %c0_1 = arith.constant 0 : index
    %0 = vector.load %arg1[%c0, %c0_0, %c0_1] : memref<2x16x256xf32, #tpu.memory_space<vmem>>, vector<2x16x256xf32>
    %c0_2 = arith.constant 0 : index
    %c0_3 = arith.constant 0 : index
    %c0_4 = arith.constant 0 : index
    %1 = vector.load %arg2[%c0_2, %c0_3, %c0_4] : memref<2x16x256xf32, #tpu.memory_space<vmem>>, vector<2x16x256xf32>
    %2 = vector.shape_cast %0 : vector<2x16x256xf32> to vector<32x256xf32>
    %3 = arith.truncf %2 : vector<32x256xf32> to vector<32x256xbf16>
    %4 = vector.shape_cast %1 : vector<2x16x256xf32> to vector<32x256xf32>
    %5 = arith.truncf %4 : vector<32x256xf32> to vector<32x256xbf16>
    %c0_5 = arith.constant 0 : index
    %c0_6 = arith.constant 0 : index
    %c0_7 = arith.constant 0 : index
    %6 = vector.load %arg3[%c0_5, %c0_6, %c0_7] : memref<2x256x128xbf16, #tpu.memory_space<vmem>>, vector<1x256x128xbf16>
    %7 = vector.shape_cast %6 : vector<1x256x128xbf16> to vector<256x128xbf16>
    %c0_8 = arith.constant 0 : index
    %c0_9 = arith.constant 0 : index
    %c0_10 = arith.constant 0 : index
    %8 = vector.load %arg4[%c0_8, %c0_9, %c0_10] : memref<2x256x128xbf16, #tpu.memory_space<vmem>>, vector<1x256x128xbf16>
    %9 = vector.shape_cast %8 : vector<1x256x128xbf16> to vector<256x128xbf16>
    %c0_11 = arith.constant 0 : index
    %c0_12 = arith.constant 0 : index
    %c0_13 = arith.constant 0 : index
    %10 = vector.load %arg5[%c0_11, %c0_12, %c0_13] : memref<2x128x128xbf16, #tpu.memory_space<vmem>>, vector<1x128x128xbf16>
    %11 = vector.shape_cast %10 : vector<1x128x128xbf16> to vector<128x128xbf16>
    %cst = arith.constant dense<0.000000e+00> : vector<32x128xf32>
    %12 = tpu.matmul %3, %7, %cst {dimension_numbers = #tpu.dot_dimension_numbers<[1], [0], [0], [1], [0, 0, 1, 1], [], []>} : vector<32x256xbf16>, vector<256x128xbf16>, vector<32x128xf32> -> vector<32x128xf32>
    %13 = arith.mulf %12, %12 : vector<32x128xf32>
    %cst_14 = arith.constant dense<0.000000e+00> : vector<32xf32>
    %14 = vector.multi_reduction <add>, %13, %cst_14 [1] : vector<32x128xf32> to vector<32xf32>
    %15 = vector.shape_cast %14 : vector<32xf32> to vector<32x1xf32>
    %cst_15 = arith.constant 1.000000e-24 : f32
    %16 = vector.broadcast %cst_15 : f32 to vector<32x1xf32>
    %17 = arith.maximumf %15, %16 : vector<32x1xf32>
    %18 = math.rsqrt %17 : vector<32x1xf32>
    %19 = vector.broadcast %18 : vector<32x1xf32> to vector<32x128xf32>
    %20 = arith.mulf %12, %19 : vector<32x128xf32>
    %cst_16 = arith.constant dense<0.000000e+00> : vector<32x128xf32>
    %21 = tpu.matmul %5, %9, %cst_16 {dimension_numbers = #tpu.dot_dimension_numbers<[1], [0], [0], [1], [0, 0, 1, 1], [], []>} : vector<32x256xbf16>, vector<256x128xbf16>, vector<32x128xf32> -> vector<32x128xf32>
    %22 = arith.mulf %21, %21 : vector<32x128xf32>
    %cst_17 = arith.constant dense<0.000000e+00> : vector<32xf32>
    %23 = vector.multi_reduction <add>, %22, %cst_17 [1] : vector<32x128xf32> to vector<32xf32>
    %24 = vector.shape_cast %23 : vector<32xf32> to vector<32x1xf32>
    %cst_18 = arith.constant 1.000000e-24 : f32
    %25 = vector.broadcast %cst_18 : f32 to vector<32x1xf32>
    %26 = arith.maximumf %24, %25 : vector<32x1xf32>
    %27 = math.rsqrt %26 : vector<32x1xf32>
    %28 = vector.broadcast %27 : vector<32x1xf32> to vector<32x128xf32>
    %29 = arith.mulf %21, %28 : vector<32x128xf32>
    %30 = arith.truncf %20 : vector<32x128xf32> to vector<32x128xbf16>
    %31 = arith.truncf %29 : vector<32x128xf32> to vector<32x128xbf16>
    %cst_19 = arith.constant dense<0.000000e+00> : vector<32x128xf32>
    %32 = tpu.matmul %30, %11, %cst_19 {dimension_numbers = #tpu.dot_dimension_numbers<[1], [0], [0], [1], [0, 0, 1, 1], [], []>} : vector<32x128xbf16>, vector<128x128xbf16>, vector<32x128xf32> -> vector<32x128xf32>
    %33 = arith.truncf %32 : vector<32x128xf32> to vector<32x128xbf16>
    %34 = vector.extract_strided_slice %33 {offsets = [0, 0], sizes = [16, 128], strides = [1, 1]} : vector<32x128xbf16> to vector<16x128xbf16>
    %35 = vector.extract_strided_slice %31 {offsets = [0, 0], sizes = [16, 128], strides = [1, 1]} : vector<32x128xbf16> to vector<16x128xbf16>
    %cst_20 = arith.constant dense<0.000000e+00> : vector<16x16xf32>
    %36 = tpu.matmul %34, %35, %cst_20 {dimension_numbers = #tpu.dot_dimension_numbers<[1], [1], [0], [0], [0, 0, 1, 0], [], []>} : vector<16x128xbf16>, vector<16x128xbf16>, vector<16x16xf32> -> vector<16x16xf32>
    %cst_21 = arith.constant dense<0xFF800000> : vector<16xf32>
    %37 = vector.multi_reduction <maximumf>, %36, %cst_21 [1] : vector<16x16xf32> to vector<16xf32>
    %38 = vector.shape_cast %37 : vector<16xf32> to vector<16x1xf32>
    %39 = vector.broadcast %38 : vector<16x1xf32> to vector<16x16xf32>
    %40 = arith.subf %36, %39 : vector<16x16xf32>
    %41 = math.exp %40 : vector<16x16xf32>
    %cst_22 = arith.constant dense<0.000000e+00> : vector<16xf32>
    %42 = vector.multi_reduction <add>, %41, %cst_22 [1] : vector<16x16xf32> to vector<16xf32>
    %43 = vector.shape_cast %42 : vector<16xf32> to vector<16x1xf32>
    %44 = tpu.reciprocal %43 {approx = true} : vector<16x1xf32> -> vector<16x1xf32>
    %45 = vector.broadcast %44 : vector<16x1xf32> to vector<16x16xf32>
    %46 = arith.mulf %41, %45 : vector<16x16xf32>
    %47 = arith.truncf %46 : vector<16x16xf32> to vector<16x16xbf16>
    %48 = vector.extract_strided_slice %30 {offsets = [0, 0], sizes = [16, 128], strides = [1, 1]} : vector<32x128xbf16> to vector<16x128xbf16>
    %cst_23 = arith.constant dense<0.000000e+00> : vector<16x128xf32>
    %49 = tpu.matmul %47, %48, %cst_23 {dimension_numbers = #tpu.dot_dimension_numbers<[1], [0], [0], [1], [0, 0, 1, 1], [], []>} : vector<16x16xbf16>, vector<16x128xbf16>, vector<16x128xf32> -> vector<16x128xf32>
    %cst_24 = arith.constant dense<0xFF800000> : vector<16xf32>
    %50 = vector.multi_reduction <maximumf>, %36, %cst_24 [0] : vector<16x16xf32> to vector<16xf32>
    %51 = vector.shape_cast %50 : vector<16xf32> to vector<1x16xf32>
    %52 = vector.broadcast %51 : vector<1x16xf32> to vector<16x16xf32>
    %53 = arith.subf %36, %52 : vector<16x16xf32>
    %54 = math.exp %53 : vector<16x16xf32>
    %cst_25 = arith.constant dense<0.000000e+00> : vector<16xf32>
    %55 = vector.multi_reduction <add>, %54, %cst_25 [0] : vector<16x16xf32> to vector<16xf32>
    %56 = vector.shape_cast %55 : vector<16xf32> to vector<1x16xf32>
    %57 = tpu.reciprocal %56 {approx = true} : vector<1x16xf32> -> vector<1x16xf32>
    %58 = vector.broadcast %57 : vector<1x16xf32> to vector<16x16xf32>
    %59 = arith.mulf %54, %58 : vector<16x16xf32>
    %60 = arith.truncf %59 : vector<16x16xf32> to vector<16x16xbf16>
    %61 = vector.extract_strided_slice %31 {offsets = [0, 0], sizes = [16, 128], strides = [1, 1]} : vector<32x128xbf16> to vector<16x128xbf16>
    %cst_26 = arith.constant dense<0.000000e+00> : vector<16x128xf32>
    %62 = tpu.matmul %60, %61, %cst_26 {dimension_numbers = #tpu.dot_dimension_numbers<[0], [0], [1], [1], [0, 1, 1, 1], [], []>} : vector<16x16xbf16>, vector<16x128xbf16>, vector<16x128xf32> -> vector<16x128xf32>
    %63 = vector.extract_strided_slice %33 {offsets = [16, 0], sizes = [16, 128], strides = [1, 1]} : vector<32x128xbf16> to vector<16x128xbf16>
    %64 = vector.extract_strided_slice %31 {offsets = [16, 0], sizes = [16, 128], strides = [1, 1]} : vector<32x128xbf16> to vector<16x128xbf16>
    %cst_27 = arith.constant dense<0.000000e+00> : vector<16x16xf32>
    %65 = tpu.matmul %63, %64, %cst_27 {dimension_numbers = #tpu.dot_dimension_numbers<[1], [1], [0], [0], [0, 0, 1, 0], [], []>} : vector<16x128xbf16>, vector<16x128xbf16>, vector<16x16xf32> -> vector<16x16xf32>
    %cst_28 = arith.constant dense<0xFF800000> : vector<16xf32>
    %66 = vector.multi_reduction <maximumf>, %65, %cst_28 [1] : vector<16x16xf32> to vector<16xf32>
    %67 = vector.shape_cast %66 : vector<16xf32> to vector<16x1xf32>
    %68 = vector.broadcast %67 : vector<16x1xf32> to vector<16x16xf32>
    %69 = arith.subf %65, %68 : vector<16x16xf32>
    %70 = math.exp %69 : vector<16x16xf32>
    %cst_29 = arith.constant dense<0.000000e+00> : vector<16xf32>
    %71 = vector.multi_reduction <add>, %70, %cst_29 [1] : vector<16x16xf32> to vector<16xf32>
    %72 = vector.shape_cast %71 : vector<16xf32> to vector<16x1xf32>
    %73 = tpu.reciprocal %72 {approx = true} : vector<16x1xf32> -> vector<16x1xf32>
    %74 = vector.broadcast %73 : vector<16x1xf32> to vector<16x16xf32>
    %75 = arith.mulf %70, %74 : vector<16x16xf32>
    %76 = arith.truncf %75 : vector<16x16xf32> to vector<16x16xbf16>
    %77 = vector.extract_strided_slice %30 {offsets = [16, 0], sizes = [16, 128], strides = [1, 1]} : vector<32x128xbf16> to vector<16x128xbf16>
    %cst_30 = arith.constant dense<0.000000e+00> : vector<16x128xf32>
    %78 = tpu.matmul %76, %77, %cst_30 {dimension_numbers = #tpu.dot_dimension_numbers<[1], [0], [0], [1], [0, 0, 1, 1], [], []>} : vector<16x16xbf16>, vector<16x128xbf16>, vector<16x128xf32> -> vector<16x128xf32>
    %cst_31 = arith.constant dense<0xFF800000> : vector<16xf32>
    %79 = vector.multi_reduction <maximumf>, %65, %cst_31 [0] : vector<16x16xf32> to vector<16xf32>
    %80 = vector.shape_cast %79 : vector<16xf32> to vector<1x16xf32>
    %81 = vector.broadcast %80 : vector<1x16xf32> to vector<16x16xf32>
    %82 = arith.subf %65, %81 : vector<16x16xf32>
    %83 = math.exp %82 : vector<16x16xf32>
    %cst_32 = arith.constant dense<0.000000e+00> : vector<16xf32>
    %84 = vector.multi_reduction <add>, %83, %cst_32 [0] : vector<16x16xf32> to vector<16xf32>
    %85 = vector.shape_cast %84 : vector<16xf32> to vector<1x16xf32>
    %86 = tpu.reciprocal %85 {approx = true} : vector<1x16xf32> -> vector<1x16xf32>
    %87 = vector.broadcast %86 : vector<1x16xf32> to vector<16x16xf32>
    %88 = arith.mulf %83, %87 : vector<16x16xf32>
    %89 = arith.truncf %88 : vector<16x16xf32> to vector<16x16xbf16>
    %90 = vector.extract_strided_slice %31 {offsets = [16, 0], sizes = [16, 128], strides = [1, 1]} : vector<32x128xbf16> to vector<16x128xbf16>
    %cst_33 = arith.constant dense<0.000000e+00> : vector<16x128xf32>
    %91 = tpu.matmul %89, %90, %cst_33 {dimension_numbers = #tpu.dot_dimension_numbers<[0], [0], [1], [1], [0, 1, 1, 1], [], []>} : vector<16x16xbf16>, vector<16x128xbf16>, vector<16x128xf32> -> vector<16x128xf32>
    %c1 = arith.constant 1 : index
    %c0_34 = arith.constant 0 : index
    %c0_35 = arith.constant 0 : index
    %92 = vector.load %arg3[%c1, %c0_34, %c0_35] : memref<2x256x128xbf16, #tpu.memory_space<vmem>>, vector<1x256x128xbf16>
    %93 = vector.shape_cast %92 : vector<1x256x128xbf16> to vector<256x128xbf16>
    %c1_36 = arith.constant 1 : index
    %c0_37 = arith.constant 0 : index
    %c0_38 = arith.constant 0 : index
    %94 = vector.load %arg4[%c1_36, %c0_37, %c0_38] : memref<2x256x128xbf16, #tpu.memory_space<vmem>>, vector<1x256x128xbf16>
    %95 = vector.shape_cast %94 : vector<1x256x128xbf16> to vector<256x128xbf16>
    %c1_39 = arith.constant 1 : index
    %c0_40 = arith.constant 0 : index
    %c0_41 = arith.constant 0 : index
    %96 = vector.load %arg5[%c1_39, %c0_40, %c0_41] : memref<2x128x128xbf16, #tpu.memory_space<vmem>>, vector<1x128x128xbf16>
    %97 = vector.shape_cast %96 : vector<1x128x128xbf16> to vector<128x128xbf16>
    %cst_42 = arith.constant dense<0.000000e+00> : vector<32x128xf32>
    %98 = tpu.matmul %3, %93, %cst_42 {dimension_numbers = #tpu.dot_dimension_numbers<[1], [0], [0], [1], [0, 0, 1, 1], [], []>} : vector<32x256xbf16>, vector<256x128xbf16>, vector<32x128xf32> -> vector<32x128xf32>
    %99 = arith.mulf %98, %98 : vector<32x128xf32>
    %cst_43 = arith.constant dense<0.000000e+00> : vector<32xf32>
    %100 = vector.multi_reduction <add>, %99, %cst_43 [1] : vector<32x128xf32> to vector<32xf32>
    %101 = vector.shape_cast %100 : vector<32xf32> to vector<32x1xf32>
    %cst_44 = arith.constant 1.000000e-24 : f32
    %102 = vector.broadcast %cst_44 : f32 to vector<32x1xf32>
    %103 = arith.maximumf %101, %102 : vector<32x1xf32>
    %104 = math.rsqrt %103 : vector<32x1xf32>
    %105 = vector.broadcast %104 : vector<32x1xf32> to vector<32x128xf32>
    %106 = arith.mulf %98, %105 : vector<32x128xf32>
    %cst_45 = arith.constant dense<0.000000e+00> : vector<32x128xf32>
    %107 = tpu.matmul %5, %95, %cst_45 {dimension_numbers = #tpu.dot_dimension_numbers<[1], [0], [0], [1], [0, 0, 1, 1], [], []>} : vector<32x256xbf16>, vector<256x128xbf16>, vector<32x128xf32> -> vector<32x128xf32>
    %108 = arith.mulf %107, %107 : vector<32x128xf32>
    %cst_46 = arith.constant dense<0.000000e+00> : vector<32xf32>
    %109 = vector.multi_reduction <add>, %108, %cst_46 [1] : vector<32x128xf32> to vector<32xf32>
    %110 = vector.shape_cast %109 : vector<32xf32> to vector<32x1xf32>
    %cst_47 = arith.constant 1.000000e-24 : f32
    %111 = vector.broadcast %cst_47 : f32 to vector<32x1xf32>
    %112 = arith.maximumf %110, %111 : vector<32x1xf32>
    %113 = math.rsqrt %112 : vector<32x1xf32>
    %114 = vector.broadcast %113 : vector<32x1xf32> to vector<32x128xf32>
    %115 = arith.mulf %107, %114 : vector<32x128xf32>
    %116 = arith.truncf %106 : vector<32x128xf32> to vector<32x128xbf16>
    %117 = arith.truncf %115 : vector<32x128xf32> to vector<32x128xbf16>
    %cst_48 = arith.constant dense<0.000000e+00> : vector<32x128xf32>
    %118 = tpu.matmul %116, %97, %cst_48 {dimension_numbers = #tpu.dot_dimension_numbers<[1], [0], [0], [1], [0, 0, 1, 1], [], []>} : vector<32x128xbf16>, vector<128x128xbf16>, vector<32x128xf32> -> vector<32x128xf32>
    %119 = arith.truncf %118 : vector<32x128xf32> to vector<32x128xbf16>
    %120 = vector.extract_strided_slice %119 {offsets = [0, 0], sizes = [16, 128], strides = [1, 1]} : vector<32x128xbf16> to vector<16x128xbf16>
    %121 = vector.extract_strided_slice %117 {offsets = [0, 0], sizes = [16, 128], strides = [1, 1]} : vector<32x128xbf16> to vector<16x128xbf16>
    %cst_49 = arith.constant dense<0.000000e+00> : vector<16x16xf32>
    %122 = tpu.matmul %120, %121, %cst_49 {dimension_numbers = #tpu.dot_dimension_numbers<[1], [1], [0], [0], [0, 0, 1, 0], [], []>} : vector<16x128xbf16>, vector<16x128xbf16>, vector<16x16xf32> -> vector<16x16xf32>
    %cst_50 = arith.constant dense<0xFF800000> : vector<16xf32>
    %123 = vector.multi_reduction <maximumf>, %122, %cst_50 [1] : vector<16x16xf32> to vector<16xf32>
    %124 = vector.shape_cast %123 : vector<16xf32> to vector<16x1xf32>
    %125 = vector.broadcast %124 : vector<16x1xf32> to vector<16x16xf32>
    %126 = arith.subf %122, %125 : vector<16x16xf32>
    %127 = math.exp %126 : vector<16x16xf32>
    %cst_51 = arith.constant dense<0.000000e+00> : vector<16xf32>
    %128 = vector.multi_reduction <add>, %127, %cst_51 [1] : vector<16x16xf32> to vector<16xf32>
    %129 = vector.shape_cast %128 : vector<16xf32> to vector<16x1xf32>
    %130 = tpu.reciprocal %129 {approx = true} : vector<16x1xf32> -> vector<16x1xf32>
    %131 = vector.broadcast %130 : vector<16x1xf32> to vector<16x16xf32>
    %132 = arith.mulf %127, %131 : vector<16x16xf32>
    %133 = arith.truncf %132 : vector<16x16xf32> to vector<16x16xbf16>
    %134 = vector.extract_strided_slice %116 {offsets = [0, 0], sizes = [16, 128], strides = [1, 1]} : vector<32x128xbf16> to vector<16x128xbf16>
    %cst_52 = arith.constant dense<0.000000e+00> : vector<16x128xf32>
    %135 = tpu.matmul %133, %134, %cst_52 {dimension_numbers = #tpu.dot_dimension_numbers<[1], [0], [0], [1], [0, 0, 1, 1], [], []>} : vector<16x16xbf16>, vector<16x128xbf16>, vector<16x128xf32> -> vector<16x128xf32>
    %cst_53 = arith.constant dense<0xFF800000> : vector<16xf32>
    %136 = vector.multi_reduction <maximumf>, %122, %cst_53 [0] : vector<16x16xf32> to vector<16xf32>
    %137 = vector.shape_cast %136 : vector<16xf32> to vector<1x16xf32>
    %138 = vector.broadcast %137 : vector<1x16xf32> to vector<16x16xf32>
    %139 = arith.subf %122, %138 : vector<16x16xf32>
    %140 = math.exp %139 : vector<16x16xf32>
    %cst_54 = arith.constant dense<0.000000e+00> : vector<16xf32>
    %141 = vector.multi_reduction <add>, %140, %cst_54 [0] : vector<16x16xf32> to vector<16xf32>
    %142 = vector.shape_cast %141 : vector<16xf32> to vector<1x16xf32>
    %143 = tpu.reciprocal %142 {approx = true} : vector<1x16xf32> -> vector<1x16xf32>
    %144 = vector.broadcast %143 : vector<1x16xf32> to vector<16x16xf32>
    %145 = arith.mulf %140, %144 : vector<16x16xf32>
    %146 = arith.truncf %145 : vector<16x16xf32> to vector<16x16xbf16>
    %147 = vector.extract_strided_slice %117 {offsets = [0, 0], sizes = [16, 128], strides = [1, 1]} : vector<32x128xbf16> to vector<16x128xbf16>
    %cst_55 = arith.constant dense<0.000000e+00> : vector<16x128xf32>
    %148 = tpu.matmul %146, %147, %cst_55 {dimension_numbers = #tpu.dot_dimension_numbers<[0], [0], [1], [1], [0, 1, 1, 1], [], []>} : vector<16x16xbf16>, vector<16x128xbf16>, vector<16x128xf32> -> vector<16x128xf32>
    %149 = vector.extract_strided_slice %119 {offsets = [16, 0], sizes = [16, 128], strides = [1, 1]} : vector<32x128xbf16> to vector<16x128xbf16>
    %150 = vector.extract_strided_slice %117 {offsets = [16, 0], sizes = [16, 128], strides = [1, 1]} : vector<32x128xbf16> to vector<16x128xbf16>
    %cst_56 = arith.constant dense<0.000000e+00> : vector<16x16xf32>
    %151 = tpu.matmul %149, %150, %cst_56 {dimension_numbers = #tpu.dot_dimension_numbers<[1], [1], [0], [0], [0, 0, 1, 0], [], []>} : vector<16x128xbf16>, vector<16x128xbf16>, vector<16x16xf32> -> vector<16x16xf32>
    %cst_57 = arith.constant dense<0xFF800000> : vector<16xf32>
    %152 = vector.multi_reduction <maximumf>, %151, %cst_57 [1] : vector<16x16xf32> to vector<16xf32>
    %153 = vector.shape_cast %152 : vector<16xf32> to vector<16x1xf32>
    %154 = vector.broadcast %153 : vector<16x1xf32> to vector<16x16xf32>
    %155 = arith.subf %151, %154 : vector<16x16xf32>
    %156 = math.exp %155 : vector<16x16xf32>
    %cst_58 = arith.constant dense<0.000000e+00> : vector<16xf32>
    %157 = vector.multi_reduction <add>, %156, %cst_58 [1] : vector<16x16xf32> to vector<16xf32>
    %158 = vector.shape_cast %157 : vector<16xf32> to vector<16x1xf32>
    %159 = tpu.reciprocal %158 {approx = true} : vector<16x1xf32> -> vector<16x1xf32>
    %160 = vector.broadcast %159 : vector<16x1xf32> to vector<16x16xf32>
    %161 = arith.mulf %156, %160 : vector<16x16xf32>
    %162 = arith.truncf %161 : vector<16x16xf32> to vector<16x16xbf16>
    %163 = vector.extract_strided_slice %116 {offsets = [16, 0], sizes = [16, 128], strides = [1, 1]} : vector<32x128xbf16> to vector<16x128xbf16>
    %cst_59 = arith.constant dense<0.000000e+00> : vector<16x128xf32>
    %164 = tpu.matmul %162, %163, %cst_59 {dimension_numbers = #tpu.dot_dimension_numbers<[1], [0], [0], [1], [0, 0, 1, 1], [], []>} : vector<16x16xbf16>, vector<16x128xbf16>, vector<16x128xf32> -> vector<16x128xf32>
    %cst_60 = arith.constant dense<0xFF800000> : vector<16xf32>
    %165 = vector.multi_reduction <maximumf>, %151, %cst_60 [0] : vector<16x16xf32> to vector<16xf32>
    %166 = vector.shape_cast %165 : vector<16xf32> to vector<1x16xf32>
    %167 = vector.broadcast %166 : vector<1x16xf32> to vector<16x16xf32>
    %168 = arith.subf %151, %167 : vector<16x16xf32>
    %169 = math.exp %168 : vector<16x16xf32>
    %cst_61 = arith.constant dense<0.000000e+00> : vector<16xf32>
    %170 = vector.multi_reduction <add>, %169, %cst_61 [0] : vector<16x16xf32> to vector<16xf32>
    %171 = vector.shape_cast %170 : vector<16xf32> to vector<1x16xf32>
    %172 = tpu.reciprocal %171 {approx = true} : vector<1x16xf32> -> vector<1x16xf32>
    %173 = vector.broadcast %172 : vector<1x16xf32> to vector<16x16xf32>
    %174 = arith.mulf %169, %173 : vector<16x16xf32>
    %175 = arith.truncf %174 : vector<16x16xf32> to vector<16x16xbf16>
    %176 = vector.extract_strided_slice %117 {offsets = [16, 0], sizes = [16, 128], strides = [1, 1]} : vector<32x128xbf16> to vector<16x128xbf16>
    %cst_62 = arith.constant dense<0.000000e+00> : vector<16x128xf32>
    %177 = tpu.matmul %175, %176, %cst_62 {dimension_numbers = #tpu.dot_dimension_numbers<[0], [0], [1], [1], [0, 1, 1, 1], [], []>} : vector<16x16xbf16>, vector<16x128xbf16>, vector<16x128xf32> -> vector<16x128xf32>
    %178 = tpu.concatenate %49, %135 in 1 : vector<16x128xf32>, vector<16x128xf32> -> vector<16x256xf32>
    %179 = tpu.concatenate %62, %148 in 1 : vector<16x128xf32>, vector<16x128xf32> -> vector<16x256xf32>
    %cst_63 = arith.constant 5.000000e-01 : f32
    %180 = vector.broadcast %cst_63 : f32 to vector<16x256xf32>
    %181 = arith.mulf %180, %178 : vector<16x256xf32>
    %cst_64 = arith.constant 0.707106769 : f32
    %182 = vector.broadcast %cst_64 : f32 to vector<16x256xf32>
    %183 = arith.mulf %178, %182 : vector<16x256xf32>
    %184 = math.absf %183 : vector<16x256xf32>
    %cst_65 = arith.constant 0.327591091 : f32
    %185 = vector.broadcast %cst_65 : f32 to vector<16x256xf32>
    %186 = arith.mulf %185, %184 : vector<16x256xf32>
    %cst_66 = arith.constant 1.000000e+00 : f32
    %187 = vector.broadcast %cst_66 : f32 to vector<16x256xf32>
    %188 = arith.addf %187, %186 : vector<16x256xf32>
    %cst_67 = arith.constant 1.000000e+00 : f32
    %189 = vector.broadcast %cst_67 : f32 to vector<16x256xf32>
    %190 = arith.divf %189, %188 : vector<16x256xf32>
    %cst_68 = arith.constant 1.06140542 : f32
    %191 = vector.broadcast %cst_68 : f32 to vector<16x256xf32>
    %192 = arith.mulf %191, %190 : vector<16x256xf32>
    %cst_69 = arith.constant -1.45315206 : f32
    %193 = vector.broadcast %cst_69 : f32 to vector<16x256xf32>
    %194 = arith.addf %192, %193 : vector<16x256xf32>
    %195 = arith.mulf %194, %190 : vector<16x256xf32>
    %cst_70 = arith.constant 1.42141378 : f32
    %196 = vector.broadcast %cst_70 : f32 to vector<16x256xf32>
    %197 = arith.addf %195, %196 : vector<16x256xf32>
    %198 = arith.mulf %197, %190 : vector<16x256xf32>
    %cst_71 = arith.constant -0.284496725 : f32
    %199 = vector.broadcast %cst_71 : f32 to vector<16x256xf32>
    %200 = arith.addf %198, %199 : vector<16x256xf32>
    %201 = arith.mulf %200, %190 : vector<16x256xf32>
    %cst_72 = arith.constant 0.254829586 : f32
    %202 = vector.broadcast %cst_72 : f32 to vector<16x256xf32>
    %203 = arith.addf %201, %202 : vector<16x256xf32>
    %204 = arith.mulf %203, %190 : vector<16x256xf32>
    %205 = arith.mulf %184, %184 : vector<16x256xf32>
    %cst_73 = arith.constant 0.000000e+00 : f32
    %206 = vector.broadcast %cst_73 : f32 to vector<16x256xf32>
    %207 = arith.subf %206, %205 : vector<16x256xf32>
    %208 = math.exp %207 : vector<16x256xf32>
    %209 = arith.mulf %204, %208 : vector<16x256xf32>
    %cst_74 = arith.constant 1.000000e+00 : f32
    %210 = vector.broadcast %cst_74 : f32 to vector<16x256xf32>
    %211 = arith.subf %210, %209 : vector<16x256xf32>
    %cst_75 = arith.constant 0.000000e+00 : f32
    %212 = vector.broadcast %cst_75 : f32 to vector<16x256xf32>
    %213 = arith.cmpf olt, %183, %212 : vector<16x256xf32>
    %cst_76 = arith.constant 0.000000e+00 : f32
    %214 = vector.broadcast %cst_76 : f32 to vector<16x256xf32>
    %215 = arith.subf %214, %211 : vector<16x256xf32>
    %216 = arith.select %213, %215, %211 : vector<16x256xi1>, vector<16x256xf32>
    %cst_77 = arith.constant 1.000000e+00 : f32
    %217 = vector.broadcast %cst_77 : f32 to vector<16x256xf32>
    %218 = arith.addf %217, %216 : vector<16x256xf32>
    %219 = arith.mulf %181, %218 : vector<16x256xf32>
    %220 = vector.extract_strided_slice %0 {offsets = [0, 0, 0], sizes = [1, 16, 256], strides = [1, 1, 1]} : vector<2x16x256xf32> to vector<1x16x256xf32>
    %221 = vector.shape_cast %220 : vector<1x16x256xf32> to vector<16x256xf32>
    %222 = arith.addf %219, %221 : vector<16x256xf32>
    %223 = math.tanh %222 : vector<16x256xf32>
    %c0_78 = arith.constant 0 : index
    %c0_79 = arith.constant 0 : index
    %c0_80 = arith.constant 0 : index
    %224 = vector.load %arg6[%c0_78, %c0_79, %c0_80] : memref<2x16x256xf32, #tpu.memory_space<vmem>>, vector<1x16x256xf32>
    %225 = vector.shape_cast %224 : vector<1x16x256xf32> to vector<16x256xf32>
    %226 = vector.shape_cast %223 : vector<16x256xf32> to vector<1x16x256xf32>
    tpu.vector_store %arg6[%c0_78, %c0_79, %c0_80], %226 {strides = array<i32>} : memref<2x16x256xf32, #tpu.memory_space<vmem>>, vector<1x16x256xf32>,
    %cst_81 = arith.constant 5.000000e-01 : f32
    %227 = vector.broadcast %cst_81 : f32 to vector<16x256xf32>
    %228 = arith.mulf %227, %179 : vector<16x256xf32>
    %cst_82 = arith.constant 0.707106769 : f32
    %229 = vector.broadcast %cst_82 : f32 to vector<16x256xf32>
    %230 = arith.mulf %179, %229 : vector<16x256xf32>
    %231 = math.absf %230 : vector<16x256xf32>
    %cst_83 = arith.constant 0.327591091 : f32
    %232 = vector.broadcast %cst_83 : f32 to vector<16x256xf32>
    %233 = arith.mulf %232, %231 : vector<16x256xf32>
    %cst_84 = arith.constant 1.000000e+00 : f32
    %234 = vector.broadcast %cst_84 : f32 to vector<16x256xf32>
    %235 = arith.addf %234, %233 : vector<16x256xf32>
    %cst_85 = arith.constant 1.000000e+00 : f32
    %236 = vector.broadcast %cst_85 : f32 to vector<16x256xf32>
    %237 = arith.divf %236, %235 : vector<16x256xf32>
    %cst_86 = arith.constant 1.06140542 : f32
    %238 = vector.broadcast %cst_86 : f32 to vector<16x256xf32>
    %239 = arith.mulf %238, %237 : vector<16x256xf32>
    %cst_87 = arith.constant -1.45315206 : f32
    %240 = vector.broadcast %cst_87 : f32 to vector<16x256xf32>
    %241 = arith.addf %239, %240 : vector<16x256xf32>
    %242 = arith.mulf %241, %237 : vector<16x256xf32>
    %cst_88 = arith.constant 1.42141378 : f32
    %243 = vector.broadcast %cst_88 : f32 to vector<16x256xf32>
    %244 = arith.addf %242, %243 : vector<16x256xf32>
    %245 = arith.mulf %244, %237 : vector<16x256xf32>
    %cst_89 = arith.constant -0.284496725 : f32
    %246 = vector.broadcast %cst_89 : f32 to vector<16x256xf32>
    %247 = arith.addf %245, %246 : vector<16x256xf32>
    %248 = arith.mulf %247, %237 : vector<16x256xf32>
    %cst_90 = arith.constant 0.254829586 : f32
    %249 = vector.broadcast %cst_90 : f32 to vector<16x256xf32>
    %250 = arith.addf %248, %249 : vector<16x256xf32>
    %251 = arith.mulf %250, %237 : vector<16x256xf32>
    %252 = arith.mulf %231, %231 : vector<16x256xf32>
    %cst_91 = arith.constant 0.000000e+00 : f32
    %253 = vector.broadcast %cst_91 : f32 to vector<16x256xf32>
    %254 = arith.subf %253, %252 : vector<16x256xf32>
    %255 = math.exp %254 : vector<16x256xf32>
    %256 = arith.mulf %251, %255 : vector<16x256xf32>
    %cst_92 = arith.constant 1.000000e+00 : f32
    %257 = vector.broadcast %cst_92 : f32 to vector<16x256xf32>
    %258 = arith.subf %257, %256 : vector<16x256xf32>
    %cst_93 = arith.constant 0.000000e+00 : f32
    %259 = vector.broadcast %cst_93 : f32 to vector<16x256xf32>
    %260 = arith.cmpf olt, %230, %259 : vector<16x256xf32>
    %cst_94 = arith.constant 0.000000e+00 : f32
    %261 = vector.broadcast %cst_94 : f32 to vector<16x256xf32>
    %262 = arith.subf %261, %258 : vector<16x256xf32>
    %263 = arith.select %260, %262, %258 : vector<16x256xi1>, vector<16x256xf32>
    %cst_95 = arith.constant 1.000000e+00 : f32
    %264 = vector.broadcast %cst_95 : f32 to vector<16x256xf32>
    %265 = arith.addf %264, %263 : vector<16x256xf32>
    %266 = arith.mulf %228, %265 : vector<16x256xf32>
    %267 = vector.extract_strided_slice %1 {offsets = [0, 0, 0], sizes = [1, 16, 256], strides = [1, 1, 1]} : vector<2x16x256xf32> to vector<1x16x256xf32>
    %268 = vector.shape_cast %267 : vector<1x16x256xf32> to vector<16x256xf32>
    %269 = arith.addf %266, %268 : vector<16x256xf32>
    %270 = math.tanh %269 : vector<16x256xf32>
    %c0_96 = arith.constant 0 : index
    %c0_97 = arith.constant 0 : index
    %c0_98 = arith.constant 0 : index
    %271 = vector.load %arg7[%c0_96, %c0_97, %c0_98] : memref<2x16x256xf32, #tpu.memory_space<vmem>>, vector<1x16x256xf32>
    %272 = vector.shape_cast %271 : vector<1x16x256xf32> to vector<16x256xf32>
    %273 = vector.shape_cast %270 : vector<16x256xf32> to vector<1x16x256xf32>
    tpu.vector_store %arg7[%c0_96, %c0_97, %c0_98], %273 {strides = array<i32>} : memref<2x16x256xf32, #tpu.memory_space<vmem>>, vector<1x16x256xf32>,
    %274 = tpu.concatenate %78, %164 in 1 : vector<16x128xf32>, vector<16x128xf32> -> vector<16x256xf32>
    %275 = tpu.concatenate %91, %177 in 1 : vector<16x128xf32>, vector<16x128xf32> -> vector<16x256xf32>
    %cst_99 = arith.constant 5.000000e-01 : f32
    %276 = vector.broadcast %cst_99 : f32 to vector<16x256xf32>
    %277 = arith.mulf %276, %274 : vector<16x256xf32>
    %cst_100 = arith.constant 0.707106769 : f32
    %278 = vector.broadcast %cst_100 : f32 to vector<16x256xf32>
    %279 = arith.mulf %274, %278 : vector<16x256xf32>
    %280 = math.absf %279 : vector<16x256xf32>
    %cst_101 = arith.constant 0.327591091 : f32
    %281 = vector.broadcast %cst_101 : f32 to vector<16x256xf32>
    %282 = arith.mulf %281, %280 : vector<16x256xf32>
    %cst_102 = arith.constant 1.000000e+00 : f32
    %283 = vector.broadcast %cst_102 : f32 to vector<16x256xf32>
    %284 = arith.addf %283, %282 : vector<16x256xf32>
    %cst_103 = arith.constant 1.000000e+00 : f32
    %285 = vector.broadcast %cst_103 : f32 to vector<16x256xf32>
    %286 = arith.divf %285, %284 : vector<16x256xf32>
    %cst_104 = arith.constant 1.06140542 : f32
    %287 = vector.broadcast %cst_104 : f32 to vector<16x256xf32>
    %288 = arith.mulf %287, %286 : vector<16x256xf32>
    %cst_105 = arith.constant -1.45315206 : f32
    %289 = vector.broadcast %cst_105 : f32 to vector<16x256xf32>
    %290 = arith.addf %288, %289 : vector<16x256xf32>
    %291 = arith.mulf %290, %286 : vector<16x256xf32>
    %cst_106 = arith.constant 1.42141378 : f32
    %292 = vector.broadcast %cst_106 : f32 to vector<16x256xf32>
    %293 = arith.addf %291, %292 : vector<16x256xf32>
    %294 = arith.mulf %293, %286 : vector<16x256xf32>
    %cst_107 = arith.constant -0.284496725 : f32
    %295 = vector.broadcast %cst_107 : f32 to vector<16x256xf32>
    %296 = arith.addf %294, %295 : vector<16x256xf32>
    %297 = arith.mulf %296, %286 : vector<16x256xf32>
    %cst_108 = arith.constant 0.254829586 : f32
    %298 = vector.broadcast %cst_108 : f32 to vector<16x256xf32>
    %299 = arith.addf %297, %298 : vector<16x256xf32>
    %300 = arith.mulf %299, %286 : vector<16x256xf32>
    %301 = arith.mulf %280, %280 : vector<16x256xf32>
    %cst_109 = arith.constant 0.000000e+00 : f32
    %302 = vector.broadcast %cst_109 : f32 to vector<16x256xf32>
    %303 = arith.subf %302, %301 : vector<16x256xf32>
    %304 = math.exp %303 : vector<16x256xf32>
    %305 = arith.mulf %300, %304 : vector<16x256xf32>
    %cst_110 = arith.constant 1.000000e+00 : f32
    %306 = vector.broadcast %cst_110 : f32 to vector<16x256xf32>
    %307 = arith.subf %306, %305 : vector<16x256xf32>
    %cst_111 = arith.constant 0.000000e+00 : f32
    %308 = vector.broadcast %cst_111 : f32 to vector<16x256xf32>
    %309 = arith.cmpf olt, %279, %308 : vector<16x256xf32>
    %cst_112 = arith.constant 0.000000e+00 : f32
    %310 = vector.broadcast %cst_112 : f32 to vector<16x256xf32>
    %311 = arith.subf %310, %307 : vector<16x256xf32>
    %312 = arith.select %309, %311, %307 : vector<16x256xi1>, vector<16x256xf32>
    %cst_113 = arith.constant 1.000000e+00 : f32
    %313 = vector.broadcast %cst_113 : f32 to vector<16x256xf32>
    %314 = arith.addf %313, %312 : vector<16x256xf32>
    %315 = arith.mulf %277, %314 : vector<16x256xf32>
    %316 = vector.extract_strided_slice %0 {offsets = [1, 0, 0], sizes = [1, 16, 256], strides = [1, 1, 1]} : vector<2x16x256xf32> to vector<1x16x256xf32>
    %317 = vector.shape_cast %316 : vector<1x16x256xf32> to vector<16x256xf32>
    %318 = arith.addf %315, %317 : vector<16x256xf32>
    %319 = math.tanh %318 : vector<16x256xf32>
    %c1_114 = arith.constant 1 : index
    %c0_115 = arith.constant 0 : index
    %c0_116 = arith.constant 0 : index
    %320 = vector.load %arg6[%c1_114, %c0_115, %c0_116] : memref<2x16x256xf32, #tpu.memory_space<vmem>>, vector<1x16x256xf32>
    %321 = vector.shape_cast %320 : vector<1x16x256xf32> to vector<16x256xf32>
    %322 = vector.shape_cast %319 : vector<16x256xf32> to vector<1x16x256xf32>
    tpu.vector_store %arg6[%c1_114, %c0_115, %c0_116], %322 {strides = array<i32>} : memref<2x16x256xf32, #tpu.memory_space<vmem>>, vector<1x16x256xf32>,
    %cst_117 = arith.constant 5.000000e-01 : f32
    %323 = vector.broadcast %cst_117 : f32 to vector<16x256xf32>
    %324 = arith.mulf %323, %275 : vector<16x256xf32>
    %cst_118 = arith.constant 0.707106769 : f32
    %325 = vector.broadcast %cst_118 : f32 to vector<16x256xf32>
    %326 = arith.mulf %275, %325 : vector<16x256xf32>
    %327 = math.absf %326 : vector<16x256xf32>
    %cst_119 = arith.constant 0.327591091 : f32
    %328 = vector.broadcast %cst_119 : f32 to vector<16x256xf32>
    %329 = arith.mulf %328, %327 : vector<16x256xf32>
    %cst_120 = arith.constant 1.000000e+00 : f32
    %330 = vector.broadcast %cst_120 : f32 to vector<16x256xf32>
    %331 = arith.addf %330, %329 : vector<16x256xf32>
    %cst_121 = arith.constant 1.000000e+00 : f32
    %332 = vector.broadcast %cst_121 : f32 to vector<16x256xf32>
    %333 = arith.divf %332, %331 : vector<16x256xf32>
    %cst_122 = arith.constant 1.06140542 : f32
    %334 = vector.broadcast %cst_122 : f32 to vector<16x256xf32>
    %335 = arith.mulf %334, %333 : vector<16x256xf32>
    %cst_123 = arith.constant -1.45315206 : f32
    %336 = vector.broadcast %cst_123 : f32 to vector<16x256xf32>
    %337 = arith.addf %335, %336 : vector<16x256xf32>
    %338 = arith.mulf %337, %333 : vector<16x256xf32>
    %cst_124 = arith.constant 1.42141378 : f32
    %339 = vector.broadcast %cst_124 : f32 to vector<16x256xf32>
    %340 = arith.addf %338, %339 : vector<16x256xf32>
    %341 = arith.mulf %340, %333 : vector<16x256xf32>
    %cst_125 = arith.constant -0.284496725 : f32
    %342 = vector.broadcast %cst_125 : f32 to vector<16x256xf32>
    %343 = arith.addf %341, %342 : vector<16x256xf32>
    %344 = arith.mulf %343, %333 : vector<16x256xf32>
    %cst_126 = arith.constant 0.254829586 : f32
    %345 = vector.broadcast %cst_126 : f32 to vector<16x256xf32>
    %346 = arith.addf %344, %345 : vector<16x256xf32>
    %347 = arith.mulf %346, %333 : vector<16x256xf32>
    %348 = arith.mulf %327, %327 : vector<16x256xf32>
    %cst_127 = arith.constant 0.000000e+00 : f32
    %349 = vector.broadcast %cst_127 : f32 to vector<16x256xf32>
    %350 = arith.subf %349, %348 : vector<16x256xf32>
    %351 = math.exp %350 : vector<16x256xf32>
    %352 = arith.mulf %347, %351 : vector<16x256xf32>
    %cst_128 = arith.constant 1.000000e+00 : f32
    %353 = vector.broadcast %cst_128 : f32 to vector<16x256xf32>
    %354 = arith.subf %353, %352 : vector<16x256xf32>
    %cst_129 = arith.constant 0.000000e+00 : f32
    %355 = vector.broadcast %cst_129 : f32 to vector<16x256xf32>
    %356 = arith.cmpf olt, %326, %355 : vector<16x256xf32>
    %cst_130 = arith.constant 0.000000e+00 : f32
    %357 = vector.broadcast %cst_130 : f32 to vector<16x256xf32>
    %358 = arith.subf %357, %354 : vector<16x256xf32>
    %359 = arith.select %356, %358, %354 : vector<16x256xi1>, vector<16x256xf32>
    %cst_131 = arith.constant 1.000000e+00 : f32
    %360 = vector.broadcast %cst_131 : f32 to vector<16x256xf32>
    %361 = arith.addf %360, %359 : vector<16x256xf32>
    %362 = arith.mulf %324, %361 : vector<16x256xf32>
    %363 = vector.extract_strided_slice %1 {offsets = [1, 0, 0], sizes = [1, 16, 256], strides = [1, 1, 1]} : vector<2x16x256xf32> to vector<1x16x256xf32>
    %364 = vector.shape_cast %363 : vector<1x16x256xf32> to vector<16x256xf32>
    %365 = arith.addf %362, %364 : vector<16x256xf32>
    %366 = math.tanh %365 : vector<16x256xf32>
    %c1_132 = arith.constant 1 : index
    %c0_133 = arith.constant 0 : index
    %c0_134 = arith.constant 0 : index
    %367 = vector.load %arg7[%c1_132, %c0_133, %c0_134] : memref<2x16x256xf32, #tpu.memory_space<vmem>>, vector<1x16x256xf32>
    %368 = vector.shape_cast %367 : vector<1x16x256xf32> to vector<16x256xf32>
    %369 = vector.shape_cast %366 : vector<16x256xf32> to vector<1x16x256xf32>
    tpu.vector_store %arg7[%c1_132, %c0_133, %c0_134], %369 {strides = array<i32>} : memref<2x16x256xf32, #tpu.memory_space<vmem>>, vector<1x16x256xf32>,
    return
  }
  func.func @transform_0(%arg0: i32) -> (i32, i32, i32) {
    %c0_i32 = arith.constant 0 : i32
    %c0_i32_0 = arith.constant 0 : i32
    %c0_i32_1 = arith.constant 0 : i32
    return %arg0, %c0_i32, %c0_i32_0 : i32, i32, i32
  }
  func.func @transform_1(%arg0: i32) -> (i32, i32, i32) {
    %c0_i32 = arith.constant 0 : i32
    %c0_i32_0 = arith.constant 0 : i32
    %c0_i32_1 = arith.constant 0 : i32
    return %arg0, %c0_i32, %c0_i32_0 : i32, i32, i32
  }
  func.func @transform_2(%arg0: i32) -> (i32, i32, i32) {
    %c0_i32 = arith.constant 0 : i32
    %c0_i32_0 = arith.constant 0 : i32
    %c0_i32_1 = arith.constant 0 : i32
    %c0_i32_2 = arith.constant 0 : i32
    return %c0_i32, %c0_i32_0, %c0_i32_1 : i32, i32, i32
  }
  func.func @transform_3(%arg0: i32) -> (i32, i32, i32) {
    %c0_i32 = arith.constant 0 : i32
    %c0_i32_0 = arith.constant 0 : i32
    %c0_i32_1 = arith.constant 0 : i32
    %c0_i32_2 = arith.constant 0 : i32
    return %c0_i32, %c0_i32_0, %c0_i32_1 : i32, i32, i32
  }
  func.func @transform_4(%arg0: i32) -> (i32, i32, i32) {
    %c0_i32 = arith.constant 0 : i32
    %c0_i32_0 = arith.constant 0 : i32
    %c0_i32_1 = arith.constant 0 : i32
    %c0_i32_2 = arith.constant 0 : i32
    return %c0_i32, %c0_i32_0, %c0_i32_1 : i32, i32, i32
  }
  func.func @transform_5(%arg0: i32) -> (i32, i32, i32) {
    %c0_i32 = arith.constant 0 : i32
    %c0_i32_0 = arith.constant 0 : i32
    %c0_i32_1 = arith.constant 0 : i32
    return %arg0, %c0_i32, %c0_i32_0 : i32, i32, i32
  }
  func.func @transform_6(%arg0: i32) -> (i32, i32, i32) {
    %c0_i32 = arith.constant 0 : i32
    %c0_i32_0 = arith.constant 0 : i32
    %c0_i32_1 = arith.constant 0 : i32
    return %arg0, %c0_i32, %c0_i32_0 : i32, i32, i32
  }
}

</mosaic_0001>

<bundles_post_ra>
// kernel: tpu_custom_call.1
= control target key start
LH: loop header
LB: loop body
LE: loop exit
PB: predicated region body
PF: predicated region fallthrough
CT: control target
= control target key end

     0   :  { %12 = vsyncpa [#allocation3], 0  ;;  %s3833_s0 = inlined_call_operand.hbm [shape: f32[2,16,256], index: 0, kind: input, shape index: {}]   ;;  %s3834_s1 = inlined_call_operand.hbm [shape: f32[2,16,256], index: 1, kind: input, shape index: {}]   ;;  %s3835_s2 = inlined_call_operand.hbm [shape: bf16[2,256,128], index: 2, kind: input, shape index: {}]   ;;  %s3836_s3 = inlined_call_operand.hbm [shape: bf16[2,256,128], index: 3, kind: input, shape index: {}]   ;;  %s3837_s4 = inlined_call_operand.hbm [shape: bf16[2,128,128], index: 4, kind: input, shape index: {}]   ;;  %s3838_s5 = inlined_call_operand.hbm [shape: f32[2,16,256], index: 5, kind: output, shape index: {0}]   ;;  %s3839_s6 = inlined_call_operand.hbm [shape: f32[2,16,256], index: 6, kind: output, shape index: {1}]  }
   0x1   :  { %13 = vsyncpa [#allocation6], 0 }
   0x2   :  { %14 = vsyncpa [#allocation9], 0 }
   0x3   :  { %15 = vsyncpa [#allocation4], 0 }
   0x4   :  { %16 = vsyncpa [#allocation13], 0  ;;  %s3256_s21 = smov [#allocation5]  }
   0x5   :  { %s34_s22 = sshll.u32 %s3256_s21, 4  ;;  %s35_s22 = int_to_ptr.vmem [resolvable:$true] %s34_s22 }
   0x6   :  { %s3114_s23 = scalar_lea.vmem %s35_s22, 1024  ;;  %p3119_p1 = scmp.lt.s32.totalorder %s35_s22, %s35_s22 }
   0x7   :  { %p3115_p0 = scmp.ne.s32.totalorder %s35_s22, %s3114_s23  ;;  %p3120_p2 = scmp.lt.s32.totalorder %s3114_s23, %s3114_s23 }
   0x9   :  { %p3121_p3 = por %p3120_p2, %p3119_p1 }
   0xb   :  { %p3122_p4 = pnand %p3121_p3, %p3115_p0 }
   0xd   :  { %3125 = shalt.err (!%p3122_p4)
}
   0xe   :  { %s3257_s24 = smov 256   ;;  %s3258_s25 = smov 16  }
   0xf   :  { %40 = dma.hbm_to_vmem [thread:$0]  %s3834_s1, 1024, %s35_s22, [#allocation6], %s3257_s24, %s3257_s24, %s3258_s25  }
  0x10   :  { %s3259_s28 = smov [#allocation8]   ;;  %s3260_s30 = smov [#allocation2]  }
  0x11   :  { %s58_s29 = sshll.u32 %s3259_s28, 4  ;;  %s22_s7 = sshll.u32 %s3260_s30, 4  ;;  %s59_s29 = int_to_ptr.vmem [resolvable:$true] %s58_s29  ;;  %s23_s7 = int_to_ptr.vmem [resolvable:$true] %s22_s7 }
  0x12   :  { %s3134_s8 = scalar_lea.vmem %s59_s29, 4096  ;;  %p3139_p6 = scmp.lt.s32.totalorder %s59_s29, %s59_s29 }
  0x13   :  { %p3135_p5 = scmp.ne.s32.totalorder %s59_s29, %s3134_s8  ;;  %p3140_p7 = scmp.lt.s32.totalorder %s3134_s8, %s3134_s8 }
  0x15   :  { %p3141_p8 = por %p3140_p7, %p3139_p6 }
  0x17   :  { %p3142_p9 = pnand %p3141_p8, %p3135_p5 }
  0x19   :  { %3145 = shalt.err (!%p3142_p9)
}
  0x1a   :  { %s3261_s9 = smov 64   ;;  %s3262_s10 = smov 4  }
  0x1b   :  { %64 = dma.hbm_to_vmem [thread:$0]  %s3836_s3, 4096, %s59_s29, [#allocation9], %s3261_s9, %s3261_s9, %s3262_s10  }
  0x1c   :  { %s3154_s1 = scalar_lea.vmem %s23_s7, 1024  ;;  %p3159_p11 = scmp.lt.s32.totalorder %s23_s7, %s23_s7 }
  0x1d   :  { %p3155_p10 = scmp.ne.s32.totalorder %s23_s7, %s3154_s1  ;;  %p3160_p12 = scmp.lt.s32.totalorder %s3154_s1, %s3154_s1 }
  0x1f   :  { %p3161_p13 = por %p3160_p12, %p3159_p11 }
  0x21   :  { %p3162_p0 = pnand %p3161_p13, %p3155_p10 }
  0x23   :  { %3165 = shalt.err (!%p3162_p0)
}
  0x24   :  { %28 = dma.hbm_to_vmem [thread:$0]  %s3833_s0, 1024, %s23_s7, [#allocation3], %s3257_s24, %s3257_s24, %s3258_s25  }
  0x25   :  { %s3263_s15 = smov [#allocation7]   ;;  %s3264_s17 = smov [#allocation10]  }
  0x26   :  { %s46_s16 = sshll.u32 %s3263_s15, 4  ;;  %s70_s3 = sshll.u32 %s3264_s17, 4  ;;  %s47_s16 = int_to_ptr.vmem [resolvable:$true] %s46_s16  ;;  %s71_s3 = int_to_ptr.vmem [resolvable:$true] %s70_s3 }
  0x27   :  { %s3174_s18 = scalar_lea.vmem %s47_s16, 4096  ;;  %p3179_p2 = scmp.lt.s32.totalorder %s47_s16, %s47_s16 }
  0x28   :  { %p3175_p1 = scmp.ne.s32.totalorder %s47_s16, %s3174_s18  ;;  %p3180_p3 = scmp.lt.s32.totalorder %s3174_s18, %s3174_s18 }
  0x2a   :  { %p3181_p4 = por %p3180_p3, %p3179_p2 }
  0x2c   :  { %p3182_p5 = pnand %p3181_p4, %p3175_p1 }
  0x2e   :  { %3185 = shalt.err (!%p3182_p5)
}
  0x2f   :  { %52 = dma.hbm_to_vmem [thread:$0]  %s3835_s2, 4096, %s47_s16, [#allocation6], %s3261_s9, %s3261_s9, %s3262_s10  }
  0x30   :  { %s3194_s0 = scalar_lea.vmem %s71_s3, 2048  ;;  %p3199_p7 = scmp.lt.s32.totalorder %s71_s3, %s71_s3 }
  0x31   :  { %p3195_p6 = scmp.ne.s32.totalorder %s71_s3, %s3194_s0  ;;  %p3200_p8 = scmp.lt.s32.totalorder %s3194_s0, %s3194_s0 }
  0x33   :  { %p3201_p9 = por %p3200_p8, %p3199_p7 }
  0x35   :  { %p3202_p10 = pnand %p3201_p9, %p3195_p6 }
  0x37   :  { %3205 = shalt.err (!%p3202_p10)
}
  0x38   :  { %76 = dma.hbm_to_vmem [thread:$0]  %s3837_s4, 2048, %s71_s3, [#allocation9], %s3261_s9, %s3261_s9, %s3262_s10  }
  0x39   :  { %3246 = dma.done.wait [#allocation3], 1024  }
  0x3a   :  { %3247 = vsyncadd [#allocation3], 4294966272 }
  0x3b   :  { %3248 = dma.done.wait [#allocation6], 5120  }
  0x3c   :  { %3249 = vsyncadd [#allocation6], 4294962176 }
  0x3d   :  { %3250 = dma.done.wait [#allocation9], 6144  }
  0x3e   :  { %3251 = vsyncadd [#allocation9], 4294961152  ;;  %v2826_v0 = vld [vmem:[#allocation7 + $0x78] sm:$0xff]   ;;  %v2828_v2 = vld [vmem:[#allocation7 + $0x70] sm:$0xff]   ;;  %vm3266_vm0 = vmmov 0   ;;  %vm679_vm1 = vcmask 130048  }
  0x3f   :  { %v2827_v1 = vld [vmem:[#allocation7 + $0x38] sm:$0xff]   ;;  %2544 = vmatprep.subr.bf16.mxu0 %v2826_v0  ;;  %v2829_v3 = vld [vmem:[#allocation7 + $0x30] sm:$0xff]   ;;  %v2830_v4 = vld [vmem:[#allocation7 + $0x68] sm:$0xff]   ;;  %s3267_s2 = smov [#allocation12]  }
  0x40   :  { %2545 = vmatpush3.bf16.msra.mxu0 %v2827_v1  ;;  %v2831_v5 = vld [vmem:[#allocation7 + $0x28] sm:$0xff]   ;;  %v2832_v6 = vld [vmem:[#allocation7 + $0x60] sm:$0xff]   ;;  %v2834_v8 = vld [vmem:[#allocation7 + $0x58] sm:$0xff]   ;;  %s2438_s4 = sshll.u32 %s3267_s2, 4  ;;  %s2439_s4 = int_to_ptr.vmem [resolvable:$true] %s2438_s4 }
  0x41   :  { %2546 = vmatprep.subr.bf16.mxu0 %v2828_v2  ;;  %v2833_v7 = vld [vmem:[#allocation7 + $0x20] sm:$0xff]   ;;  %v2835_v9 = vld [vmem:[#allocation7 + $0x18] sm:$0xff]   ;;  %v2836_v10 = vld [vmem:[#allocation7 + $0x50] sm:$0xff]   ;;  %s3206_s23 = scalar_lea.vmem %s2439_s4, 1024  ;;  %p3211_p12 = scmp.lt.s32.totalorder %s2439_s4, %s2439_s4 }
  0x42   :  { %v94_v11 = vld [vmem:[#allocation2 + $0x8] sm:$0xff]  ;;  %v96_v12 = vld [vmem:[#allocation2 + $0x18] sm:$0xff]  ;;  %v2837_v13 = vld [vmem:[#allocation7 + $0x10] sm:$0xff]   ;;  %p3207_p11 = scmp.ne.s32.totalorder %s2439_s4, %s3206_s23  ;;  %p3212_p13 = scmp.lt.s32.totalorder %s3206_s23, %s3206_s23 }
  0x43   :  { %v3334_v14 = vpack.c.bf16 %v96_v12, %v94_v11  ;;  %v2842_v15 = vld [vmem:[#allocation8 + $0x78] sm:$0xff]   ;;  %v2838_v16 = vld [vmem:[#allocation7 + $0x48] sm:$0xff]   ;;  %v2844_v18 = vld [vmem:[#allocation8 + $0x70] sm:$0xff]  }
  0x44   :  { %2547 = vmatpush3.bf16.msra.mxu0 %v2829_v3  ;;  %v2843_v17 = vld [vmem:[#allocation8 + $0x38] sm:$0xff]   ;;  %2572 = vmatprep.subr.bf16.mxu1 %v2842_v15  ;;  %v2845_v19 = vld [vmem:[#allocation8 + $0x30] sm:$0xff]   ;;  %v2846_v20 = vld [vmem:[#allocation8 + $0x68] sm:$0xff]   ;;  %p3213_p0 = por %p3212_p13, %p3211_p12 }
  0x45   :  { %2548 = vmatprep.subr.bf16.mxu0 %v2830_v4  ;;  %325 = vmatprep.mubr.bf16.mxu0 %v3334_v14  ;;  %v2839_v21 = vld [vmem:[#allocation7 + $0x8] sm:$0xff]   ;;  %v2840_v22 = vld [vmem:[#allocation7 + $0x40] sm:$0xff]   ;;  %v95_v25 = vld [vmem:[#allocation2 + $0x10] sm:$0xff] }
  0x46   :  { %2573 = vmatpush3.bf16.msra.mxu1 %v2843_v17  ;;  %v2841_v23 = vld [vmem:[#allocation7] sm:$0xff]   ;;  %v2847_v26 = vld [vmem:[#allocation8 + $0x28] sm:$0xff]   ;;  %v100_v29 = vld [vmem:[#allocation2 + $0x38] sm:$0xff]  ;;  %p3214_p1 = pnand %p3213_p0, %p3207_p11 }
  0x47   :  { %2574 = vmatprep.subr.bf16.mxu1 %v2844_v18  ;;  %v93_v24 = vld [vmem:[#allocation2] sm:$0xff]  ;;  %v98_v28 = vld [vmem:[#allocation2 + $0x28] sm:$0xff]  ;;  %v2850_v32 = vld [vmem:[#allocation8 + $0x58] sm:$0xff]  }
  0x48   :  { %2549 = vmatpush3.bf16.msra.mxu0 %v2831_v5  ;;  %v2848_v27 = vld [vmem:[#allocation8 + $0x60] sm:$0xff]   ;;  %v3337_v31 = vpack.c.bf16 %v95_v25, %v93_v24  ;;  %v3339_v33 = vpack.c.bf16 %v100_v29, %v98_v28  ;;  %v2851_v34 = vld [vmem:[#allocation8 + $0x18] sm:$0xff]   ;;  %v2852_v35 = vld [vmem:[#allocation8 + $0x50] sm:$0xff]  }
  0x49   :  { %2550 = vmatprep.subr.bf16.mxu0 %v2832_v6  ;;  %v2849_v30 = vld [vmem:[#allocation8 + $0x20] sm:$0xff]   ;;  %v102_v36 = vld [vmem:[#allocation5 + $0x8] sm:$0xff]  ;;  %v99_v38 = vld [vmem:[#allocation2 + $0x30] sm:$0xff] }
  0x4a   :  { %2575 = vmatpush3.bf16.msra.mxu1 %v2845_v19  ;;  %v97_v37 = vld [vmem:[#allocation2 + $0x20] sm:$0xff]  ;;  %v104_v39 = vld [vmem:[#allocation5 + $0x18] sm:$0xff]  ;;  %v2853_v40 = vld [vmem:[#allocation8 + $0x10] sm:$0xff]  }
  0x4b   :  { %2576 = vmatprep.subr.bf16.mxu1 %v2846_v20  ;;  %v3343_v41 = vpack.c.bf16 %v104_v39, %v102_v36  ;;  %v2854_v42 = vld [vmem:[#allocation8 + $0x48] sm:$0xff]   ;;  %v3345_v43 = vpack.c.bf16 %v99_v38, %v97_v37  ;;  %v2856_v45 = vld [vmem:[#allocation8 + $0x40] sm:$0xff]   ;;  %v103_v48 = vld [vmem:[#allocation5 + $0x10] sm:$0xff] }
  0x4c   :  { %2551 = vmatpush3.bf16.msra.mxu0 %v2833_v7  ;;  %v2855_v44 = vld [vmem:[#allocation8 + $0x8] sm:$0xff]   ;;  %v2857_v46 = vld [vmem:[#allocation8] sm:$0xff]   ;;  %v108_v50 = vld [vmem:[#allocation5 + $0x38] sm:$0xff] }
  0x4d   :  { %2552 = vmatprep.subr.bf16.mxu0 %v2834_v8  ;;  %494 = vmatprep.mubr.bf16.mxu1 %v3343_v41  ;;  %v101_v47 = vld [vmem:[#allocation5] sm:$0xff]  ;;  %v106_v49 = vld [vmem:[#allocation5 + $0x28] sm:$0xff]  ;;  %v107_v54 = vld [vmem:[#allocation5 + $0x30] sm:$0xff] }
  0x4e   :  { %2577 = vmatpush3.bf16.msra.mxu1 %v2847_v26  ;;  %v3349_v51 = vpack.c.bf16 %v103_v48, %v101_v47  ;;  %v3351_v52 = vpack.c.bf16 %v108_v50, %v106_v49  ;;  %v105_v53 = vld [vmem:[#allocation5 + $0x20] sm:$0xff]  ;;  %v2858_v7 = vld [vmem:[#allocation10 + $0x38] sm:$0xff]  }
  0x4f   :  { %2578 = vmatprep.subr.bf16.mxu1 %v2848_v27  ;;  %v3355_v55 = vpack.c.bf16 %v107_v54, %v105_v53  ;;  %v2862_v26 = vld [vmem:[#allocation10 + $0x18] sm:$0xff]   ;;  %v2863_v27 = vld [vmem:[#allocation10 + $0x10] sm:$0xff]  }
  0x50   :  { %2553 = vmatpush3.bf16.msra.mxu0 %v2835_v9 }
  0x51   :  { %2554 = vmatprep.subr.bf16.mxu0 %v2836_v10  ;;  %v2859_v10 = vld [vmem:[#allocation10 + $0x30] sm:$0xff]  }
  0x52   :  { %2579 = vmatpush3.bf16.msra.mxu1 %v2849_v30 }
  0x53   :  { %2580 = vmatprep.subr.bf16.mxu1 %v2850_v32  ;;  %v2864_v32 = vld [vmem:[#allocation10 + $0x8] sm:$0xff]  }
  0x54   :  { %2555 = vmatpush3.bf16.msra.mxu0 %v2837_v13 }
  0x55   :  { %2556 = vmatprep.subr.bf16.mxu0 %v2838_v16  ;;  %v2860_v16 = vld [vmem:[#allocation10 + $0x28] sm:$0xff]  }
  0x56   :  { %2581 = vmatpush3.bf16.msra.mxu1 %v2851_v34  ;;  %v2865_v34 = vld [vmem:[#allocation10] sm:$0xff]  }
  0x57   :  { %2582 = vmatprep.subr.bf16.mxu1 %v2852_v35  ;;  %v3265_v35 = vmov 0.0  }
  0x58   :  { %2557 = vmatpush3.bf16.msra.mxu0 %v2839_v21  ;;  %v2861_v21 = vld [vmem:[#allocation10 + $0x20] sm:$0xff]  }
  0x59   :  { %2558 = vmatprep.subr.bf16.mxu0 %v2840_v22 }
  0x5a   :  { %2583 = vmatpush3.bf16.msra.mxu1 %v2853_v40 }
  0x5b   :  { %2584 = vmatprep.subr.bf16.mxu1 %v2854_v42 }
  0x5c   :  { %2559 = vmatpush3.bf16.msra.mxu0 %v2841_v23 }
  0x5d   :  { %2700 = vmatprep.subr.bf16.mxu0 %v2858_v7 }
  0x5e   :  { %2585 = vmatpush3.bf16.msra.mxu1 %v2855_v44 }
  0x5f   :  { %326 = vmatmul.mubr.bf16.vlgmr.msra.gmra.mxu0 %v3337_v31  ;;  %2586 = vmatprep.subr.bf16.mxu1 %v2856_v45 }
  0x60   :  { %333 = vmatprep.mubr.bf16.mxu0 %v3339_v33  ;;  %2701 = vmatpush3.bf16.msra.mxu0 %v2858_v7 }
  0x61   :  { %2702 = vmatprep.subr.bf16.mxu0 %v2859_v10 }
  0x62   :  { %2587 = vmatpush3.bf16.msra.mxu1 %v2857_v46 }
  0x63   :  { %2720 = vmatprep.subr.bf16.mxu1 %v3265_v35 }
  0x64   :  { %2703 = vmatpush3.bf16.msra.mxu0 %v2859_v10 }
  0x65   :  { %495 = vmatmul.mubr.bf16.vlgmr.msra.gmra.mxu1 %v3349_v51  ;;  %2704 = vmatprep.subr.bf16.mxu0 %v2860_v16 }
  0x66   :  { %502 = vmatprep.mubr.bf16.mxu1 %v3351_v52 }
  0x67   :  { %334 = vmatmul.mubr.bf16.gmra.mxu0 %v3345_v43 }
  0x68   :  { %2705 = vmatpush3.bf16.msra.mxu0 %v2860_v16 }
  0x69   :  { %2706 = vmatprep.subr.bf16.mxu0 %v2861_v21 }
  0x6c   :  { %2707 = vmatpush3.bf16.msra.mxu0 %v2861_v21 }
  0x6d   :  { %503 = vmatmul.mubr.bf16.gmra.mxu1 %v3355_v55  ;;  %2708 = vmatprep.subr.bf16.mxu0 %v2862_v26 }
  0x6e   :  { %2722 = vmatprep.mubr.msk.bf16.mxu1 %vm3266_vm0, %v3265_v35 }
  0x70   :  { %2709 = vmatpush3.bf16.msra.mxu0 %v2862_v26 }
  0x71   :  { %2710 = vmatprep.subr.bf16.mxu0 %v2863_v27 }
  0x74   :  { %2711 = vmatpush3.bf16.msra.mxu0 %v2863_v27 }
  0x75   :  { %2712 = vmatprep.subr.bf16.mxu0 %v2864_v32 }
  0x78   :  { %2713 = vmatpush3.bf16.msra.mxu0 %v2864_v32 }
  0x79   :  { %2714 = vmatprep.subr.bf16.mxu0 %v2865_v34 }
  0x7c   :  { %2715 = vmatpush3.bf16.msra.mxu0 %v2865_v34 }
  0x7d   :  { %2738 = vmatprep.subr.bf16.mxu0 %v3265_v35 }
 0x11f   :  { %v2560_v56 = vpop.f32.mrf.mxu0 }
 0x121   :  { %v2561_v57 = vpop.f32.mrf.mxu0 }
 0x122   :  { %v3358_v58 = vadd.f32 %v2561_v57, %v2560_v56 }
 0x123   :  { %v2563_v59 = vpop.f32.mrf.mxu0 }
 0x124   :  { %v342_v60 = vmul.f32 %v3358_v58, %v3358_v58 }
 0x125   :  { %v2564_v61 = vpop.f32.mrf.mxu0  ;;  %v2588_v9 = vpop.f32.mrf.mxu1 }
 0x126   :  { %v3362_v62 = vadd.f32 %v2564_v61, %v2563_v59  ;;  %346 = vadd.xlane.f32.xlu0 %v342_v60 }
 0x127   :  { %v2566_v63 = vpop.f32.mrf.mxu0  ;;  %v2589_v11 = vpop.f32.mrf.mxu1 }
 0x128   :  { %v343_v0 = vmul.f32 %v3362_v62, %v3362_v62  ;;  %v3374_v12 = vadd.f32 %v2589_v11, %v2588_v9 }
 0x129   :  { %v2567_v1 = vpop.f32.mrf.mxu0  ;;  %v2591_v13 = vpop.f32.mrf.mxu1 }
 0x12a   :  { %v3366_v2 = vadd.f32 %v2567_v1, %v2566_v63  ;;  %348 = vadd.xlane.f32.xlu0 %v343_v0  ;;  %v511_v15 = vmul.f32 %v3374_v12, %v3374_v12 }
 0x12b   :  { %v2569_v3 = vpop.f32.mrf.mxu0  ;;  %v2592_v17 = vpop.f32.mrf.mxu1 }
 0x12c   :  { %v344_v4 = vmul.f32 %v3366_v2, %v3366_v2  ;;  %v3378_v18 = vadd.f32 %v2592_v17, %v2591_v13 }
 0x12d   :  { %v2570_v5 = vpop.f32.mrf.mxu0  ;;  %v2594_v19 = vpop.f32.mrf.mxu1 }
 0x12e   :  { %v3370_v6 = vadd.f32 %v2570_v5, %v2569_v3  ;;  %350 = vadd.xlane.f32.xlu1 %v344_v4  ;;  %515 = vadd.xlane.f32.xlu0 %v511_v15  ;;  %v512_v20 = vmul.f32 %v3378_v18, %v3378_v18 }
 0x12f   :  { %v2595_v22 = vpop.f32.mrf.mxu1 }
 0x130   :  { %v345_v8 = vmul.f32 %v3370_v6, %v3370_v6  ;;  %v3382_v23 = vadd.f32 %v2595_v22, %v2594_v19 }
 0x131   :  { %v2597_v24 = vpop.f32.mrf.mxu1 }
 0x132   :  { %352 = vadd.xlane.f32.xlu1 %v345_v8  ;;  %v513_v25 = vmul.f32 %v3382_v23, %v3382_v23 }
 0x133   :  { %v2598_v28 = vpop.f32.mrf.mxu1 }
 0x134   :  { %v3386_v29 = vadd.f32 %v2598_v28, %v2597_v24  ;;  %519 = vadd.xlane.f32.xlu0 %v513_v25 }
 0x136   :  { %517 = vadd.xlane.f32.xlu1 %v512_v20  ;;  %v514_v30 = vmul.f32 %v3386_v29, %v3386_v29 }
 0x13a   :  { %521 = vadd.xlane.f32.xlu1 %v514_v30 }
 0x1af   :  { %v347_v36 = vpop.xlane.xlu0 %346 }
 0x1b0   :  { %v354_v37 = vmax.f32 %v347_v36, 1e-24 }
 0x1b2   :  { %2906 = vrsqrt.f32 %v354_v37 }
 0x1b3   :  { %v349_v38 = vpop.xlane.xlu0 %348 }
 0x1b4   :  { %v355_v39 = vmax.f32 %v349_v38, 1e-24 }
 0x1b6   :  { %2908 = vrsqrt.f32 %v355_v39 }
 0x1b7   :  { %v351_v40 = vpop.xlane.xlu1 %350  ;;  %v516_v47 = vpop.xlane.xlu0 %515 }
 0x1b8   :  { %v356_v42 = vmax.f32 %v351_v40, 1e-24  ;;  %v523_v48 = vmax.f32 %v516_v47, 1e-24 }
 0x1ba   :  { %2910 = vrsqrt.f32 %v356_v42 }
 0x1bb   :  { %v353_v44 = vpop.xlane.xlu1 %352 }
 0x1bc   :  { %v357_v45 = vmax.f32 %v353_v44, 1e-24 }
 0x1bd   :  { %v520_v60 = vpop.xlane.xlu0 %519 }
 0x1be   :  { %2912 = vrsqrt.f32 %v357_v45  ;;  %v525_v61 = vmax.f32 %v520_v60, 1e-24 }
 0x1bf   :  { %v2907_v46 = vpop.eup %2906  ;;  %2914 = vrsqrt.f32 %v523_v48  ;;  %v518_v54 = vpop.xlane.xlu1 %517 }
 0x1c0   :  { %v362_v50 = vmul.f32 %v2907_v46, %v3358_v58  ;;  %v524_v57 = vmax.f32 %v518_v54, 1e-24 }
 0x1c2   :  { %2916 = vrsqrt.f32 %v524_v57 }
 0x1c3   :  { %v2909_v49 = vpop.eup %2908  ;;  %2918 = vrsqrt.f32 %v525_v61  ;;  %v522_v3 = vpop.xlane.xlu1 %521 }
 0x1c4   :  { %v363_v53 = vmul.f32 %v2909_v49, %v3362_v62  ;;  %v526_v58 = vmax.f32 %v522_v3, 1e-24 }
 0x1c6   :  { %v535_v56 = vpack.c.bf16 %v363_v53, %v362_v50  ;;  %2920 = vrsqrt.f32 %v526_v58 }
 0x1c7   :  { %v2911_v59 = vpop.eup %2910 }
 0x1c8   :  { %2716 = vmatprep.mubr.bf16.mxu0 %v535_v56  ;;  %v364_v0 = vmul.f32 %v2911_v59, %v3366_v2 }
 0x1cb   :  { %v2913_v63 = vpop.eup %2912 }
 0x1cc   :  { %v365_v1 = vmul.f32 %v2913_v63, %v3370_v6  ;;  %v2915_v62 = vpop.eup %2914 }
 0x1cd   :  { %v531_v5 = vmul.f32 %v2915_v62, %v3374_v12 }
 0x1ce   :  { %v3396_v4 = vpack.c.bf16 %v365_v1, %v364_v0 }
 0x1cf   :  { %v2917_v7 = vpop.eup %2916 }
 0x1d0   :  { %2717 = vmatmul.mubr.bf16.vlgmr.msra.gmra.mxu0 %v3396_v4  ;;  %v532_v8 = vmul.f32 %v2917_v7, %v3378_v18  ;;  %v2919_v10 = vpop.eup %2918 }
 0x1d1   :  { %v533_v2 = vmul.f32 %v2919_v10, %v3382_v23  ;;  %2740 = vmatprep.mubr.msk.bf16.mxu0 %vm3266_vm0, %v3265_v35 }
 0x1d2   :  { %v3401_v9 = vpack.c.bf16 %v532_v8, %v531_v5 }
 0x1d3   :  { %v2921_v6 = vpop.eup %2920 }
 0x1d4   :  { %2721 = vmatpush3.bf16.xpose.msra.mxu1 %v3401_v9  ;;  %v534_v11 = vmul.f32 %v2921_v6, %v3386_v29 }
 0x1d5   :  { %2726 = vmatprep.subr.bf16.mxu1 %v3265_v35 }
 0x1d6   :  { %v538_v13 = vpack.c.bf16 %v534_v11, %v533_v2 }
 0x1d8   :  { %2739 = vmatpush3.bf16.xpose.msra.mxu0 %v538_v13 }
 0x1d9   :  { %2750 = vmatprep.subr.bf16.mxu0 %v3265_v35 }
 0x290   :  { %v2718_v12 = vpop.f32.mrf.mxu0 }
 0x292   :  { %v621_v15 = vpop.f32.mrf.mxu0 }
 0x294   :  { %v2719_v16 = vpop.f32.mrf.mxu0 }
 0x295   :  { %v637_v17 = vpack.c.bf16 %v2719_v16, %v2718_v12 }
 0x296   :  { %v624_v18 = vpop.f32.mrf.mxu0 }
 0x297   :  { %v636_v19 = vpack.c.bf16 %v624_v18, %v621_v15  ;;  %2741 = vmatmul.mubr.bf16.vlgmr.msra.gmra.mxu0 %v637_v17 }
 0x298   :  { %2751 = vmatpush3.bf16.msra.mxu0 %v538_v13  ;;  %2752 = vmatprep.mubr.msk.bf16.mxu0 %vm3266_vm0, %v3265_v35 }
 0x299   :  { %2723 = vmatmul.mubr.bf16.vlgmr.msra.gmra.mxu1 %v636_v19 }
 0x29a   :  { %2727 = vmatpush3.bf16.msra.mxu1 %v535_v56  ;;  %2728 = vmatprep.mubr.msk.bf16.mxu1 %vm3266_vm0, %v3265_v35 }
 0x29b   :  { %2732 = vmatprep.subr.bf16.mxu1 %v3265_v35 }
 0x357   :  { %v867_v20 = vpop.f32.mrf.mxu0 }
 0x358   :  { %v874_v26 = vsel %vm679_vm1, %v867_v20, -inf }
 0x359   :  { %v672_v21 = vpop.f32.mrf.mxu1  ;;  %v2742_v22 = vpop.f32.mrf.mxu0 }
 0x35a   :  { %v680_v23 = vsel %vm679_vm1, %v672_v21, -inf }
 0x35b   :  { %681 = vmax.xlane.f32.xlu0 %v680_v23  ;;  %v2724_v24 = vpop.f32.mrf.mxu1  ;;  %v870_v25 = vpop.f32.mrf.mxu0 }
 0x35c   :  { %v877_v27 = vsel %vm679_vm1, %v870_v25, -inf }
 0x35d   :  { %v675_v28 = vpop.f32.mrf.mxu1  ;;  %v2743_v29 = vpop.f32.mrf.mxu0  ;;  %v941_v30 = vmax.f32 %v874_v26, %v877_v27 }
 0x35e   :  { %v683_v32 = vsel %vm679_vm1, %v675_v28, -inf }
 0x35f   :  { %684 = vmax.xlane.f32.xlu1 %v683_v32  ;;  %v747_v34 = vmax.f32 %v680_v23, %v683_v32  ;;  %v2725_v36 = vpop.f32.mrf.mxu1  ;;  %875 = vmax.xlane.f32.xlu0 %v874_v26  ;;  %v942_v38 = vrot.slane %v941_v30, 4 }
 0x361   :  { %v748_v37 = vrot.slane %v747_v34, 4  ;;  %v943_v40 = vmax.f32 %v941_v30, %v942_v38 }
 0x363   :  { %878 = vmax.xlane.f32.xlu1 %v877_v27  ;;  %v749_v39 = vmax.f32 %v747_v34, %v748_v37  ;;  %v944_v44 = vrot.slane %v943_v40, 2 }
 0x365   :  { %v750_v42 = vrot.slane %v749_v39, 2  ;;  %v945_v46 = vmax.f32 %v943_v40, %v944_v44 }
 0x367   :  { %v751_v45 = vmax.f32 %v749_v39, %v750_v42  ;;  %v946_v48 = vrot.slane %v945_v46, 1 }
 0x369   :  { %v752_v47 = vrot.slane %v751_v45, 1  ;;  %v947_v50 = vmax.f32 %v945_v46, %v946_v48 }
 0x36b   :  { %v753_v49 = vmax.f32 %v751_v45, %v752_v47  ;;  %v948_v56 = vsub.f32 %v867_v20, %v947_v50  ;;  %v949_v59 = vsub.f32 %v870_v25, %v947_v50 }
 0x36d   :  { %v754_v53 = vsub.f32 %v672_v21, %v753_v49  ;;  %v755_v54 = vsub.f32 %v675_v28, %v753_v49  ;;  %v950_v61 = vmul.f32 1.442695, %v948_v56  ;;  %v952_v63 = vmul.f32 1.442695, %v949_v59 }
 0x36f   :  { %v756_v57 = vmul.f32 1.442695, %v754_v53  ;;  %v758_v60 = vmul.f32 1.442695, %v755_v54 }
 0x371   :  { %2922 = vpow2.f32 %v756_v57 }
 0x372   :  { %2924 = vpow2.f32 %v758_v60  ;;  %v2882_v60 = vld [vmem:[#allocation8 + $0xf8] sm:$0xff]  }
 0x373   :  { %2926 = vpow2.f32 %v950_v61  ;;  %2650 = vmatprep.subr.bf16.mxu0 %v2882_v60 }
 0x374   :  { %2928 = vpow2.f32 %v952_v63 }
 0x37e   :  { %v2923_v13 = vpop.eup %2922 }
 0x37f   :  { %v2925_v12 = vpop.eup %2924  ;;  %v760_v17 = vsel %vm679_vm1, %v2923_v13, 0.0 }
 0x380   :  { %v2927_v15 = vpop.eup %2926  ;;  %v761_v18 = vsel %vm679_vm1, %v2925_v12, 0.0 }
 0x381   :  { %v2929_v16 = vpop.eup %2928  ;;  %v762_v23 = vadd.f32 %v761_v18, %v760_v17  ;;  %v2866_v17 = vld [vmem:[#allocation7 + $0xf8] sm:$0xff]  }
 0x382   :  { %v955_v22 = vsel %vm679_vm1, %v2929_v16, 0.0  ;;  %v2891_v18 = vld [vmem:[#allocation8 + $0x98] sm:$0xff]  }
 0x383   :  { %v763_v29 = vrot.slane %v762_v23, 4 }
 0x385   :  { %v764_v36 = vadd.f32 %v763_v29, %v762_v23  ;;  %v2894_v23 = vld [vmem:[#allocation8 + $0xc8] sm:$0xff]  }
 0x386   :  { %v2895_v29 = vld [vmem:[#allocation8 + $0x88] sm:$0xff]  }
 0x387   :  { %v765_v38 = vrot.slane %v764_v36, 2 }
 0x389   :  { %v766_v40 = vadd.f32 %v765_v38, %v764_v36  ;;  %v2872_v36 = vld [vmem:[#allocation7 + $0xe0] sm:$0xff]   ;;  %v2874_v38 = vld [vmem:[#allocation7 + $0xd8] sm:$0xff]  }
 0x38b   :  { %v767_v44 = vrot.slane %v766_v40, 1 }
 0x38d   :  { %v768_v46 = vadd.f32 %v767_v44, %v766_v40  ;;  %v2877_v40 = vld [vmem:[#allocation7 + $0x90] sm:$0xff]   ;;  %v2879_v44 = vld [vmem:[#allocation7 + $0x88] sm:$0xff]  }
 0x3e4   :  { %v682_v0 = vpop.xlane.xlu0 %681 }
 0x3e5   :  { %v686_v1 = vsub.f32 %v672_v21, %v682_v0 }
 0x3e7   :  { %v688_v3 = vmul.f32 1.442695, %v686_v1  ;;  %v2883_v1 = vld [vmem:[#allocation8 + $0xb8] sm:$0xff]  }
 0x3e8   :  { %v685_v58 = vpop.xlane.xlu1 %684  ;;  %v876_v62 = vpop.xlane.xlu0 %875 }
 0x3e9   :  { %2930 = vpow2.f32 %v688_v3  ;;  %v687_v5 = vsub.f32 %v675_v28, %v685_v58  ;;  %v880_v7 = vsub.f32 %v867_v20, %v876_v62  ;;  %v954_v20 = vsel %vm679_vm1, %v2927_v15, 0.0  ;;  %v2884_v3 = vld [vmem:[#allocation8 + $0xf0] sm:$0xff]  }
 0x3ea   :  { %v956_v27 = vadd.f32 %v955_v22, %v954_v20  ;;  %v2893_v22 = vld [vmem:[#allocation8 + $0x90] sm:$0xff]  }
 0x3eb   :  { %v690_v8 = vmul.f32 1.442695, %v687_v5  ;;  %v882_v10 = vmul.f32 1.442695, %v880_v7  ;;  %v2885_v7 = vld [vmem:[#allocation8 + $0xb0] sm:$0xff]  }
 0x3ec   :  { %v879_v2 = vpop.xlane.xlu1 %878  ;;  %v957_v34 = vrot.slane %v956_v27, 4 }
 0x3ed   :  { %2932 = vpow2.f32 %v690_v8  ;;  %v881_v6 = vsub.f32 %v870_v25, %v879_v2  ;;  %v2886_v8 = vld [vmem:[#allocation8 + $0xe8] sm:$0xff]  }
 0x3ee   :  { %2934 = vpow2.f32 %v882_v10  ;;  %v958_v37 = vadd.f32 %v957_v34, %v956_v27  ;;  %v2897_v34 = vld [vmem:[#allocation8 + $0x80] sm:$0xff]  }
 0x3ef   :  { %v884_v11 = vmul.f32 1.442695, %v881_v6 }
 0x3f0   :  { %v959_v39 = vrot.slane %v958_v37, 2 }
 0x3f1   :  { %2936 = vpow2.f32 %v884_v11 }
 0x3f2   :  { %v960_v42 = vadd.f32 %v959_v39, %v958_v37  ;;  %2938 = vrcp.f32 %v768_v46  ;;  %v2873_v37 = vld [vmem:[#allocation7 + $0xa0] sm:$0xff]   ;;  %v2876_v39 = vld [vmem:[#allocation7 + $0xd0] sm:$0xff]  }
 0x3f4   :  { %v961_v45 = vrot.slane %v960_v42, 1 }
 0x3f6   :  { %v2931_v19 = vpop.eup %2930  ;;  %v962_v47 = vadd.f32 %v961_v45, %v960_v42  ;;  %v2878_v42 = vld [vmem:[#allocation7 + $0xc8] sm:$0xff]   ;;  %v2881_v45 = vld [vmem:[#allocation7 + $0x80] sm:$0xff]  }
 0x3f7   :  { %v692_v21 = vsel %vm679_vm1, %v2931_v19, 0.0 }
 0x3f8   :  { %693 = vadd.xlane.f32.xlu0 %v692_v21  ;;  %2940 = vrcp.f32 %v962_v47  ;;  %v2892_v21 = vld [vmem:[#allocation8 + $0xd0] sm:$0xff]  }
 0x3fa   :  { %v2933_v24 = vpop.eup %2932 }
 0x3fb   :  { %v3426_v25 = vpop.eup %2934  ;;  %v695_v26 = vsel %vm679_vm1, %v2933_v24, 0.0 }
 0x3fc   :  { %696 = vadd.xlane.f32.xlu1 %v695_v26  ;;  %v886_v28 = vsel %vm679_vm1, %v3426_v25, 0.0  ;;  %v2867_v26 = vld [vmem:[#allocation7 + $0xb8] sm:$0xff]  }
 0x3fd   :  { %887 = vadd.xlane.f32.xlu0 %v886_v28  ;;  %v2868_v28 = vld [vmem:[#allocation7 + $0xf0] sm:$0xff]  }
 0x3fe   :  { %v3431_v30 = vpop.eup %2936 }
 0x3ff   :  { %v889_v32 = vsel %vm679_vm1, %v3431_v30, 0.0  ;;  %v2939_v48 = vpop.eup %2938 }
 0x400   :  { %890 = vadd.xlane.f32.xlu1 %v889_v32  ;;  %v770_v50 = vmul.f32 %v2939_v48, %v2923_v13  ;;  %v771_v53 = vmul.f32 %v2939_v48, %v2925_v12  ;;  %v2887_v13 = vld [vmem:[#allocation8 + $0xa8] sm:$0xff]   ;;  %v2888_v12 = vld [vmem:[#allocation8 + $0xe0] sm:$0xff]  }
 0x401   :  { %v2896_v32 = vld [vmem:[#allocation8 + $0xc0] sm:$0xff]  }
 0x402   :  { %v772_v57 = vpack.c.bf16 %v771_v53, %v770_v50 }
 0x405   :  { %v2941_v49 = vpop.eup %2940 }
 0x406   :  { %v964_v54 = vmul.f32 %v2941_v49, %v2927_v15  ;;  %v965_v56 = vmul.f32 %v2941_v49, %v2929_v16  ;;  %v2890_v15 = vld [vmem:[#allocation8 + $0xd8] sm:$0xff]  }
 0x408   :  { %v966_v59 = vpack.c.bf16 %v965_v56, %v964_v54 }
 0x42a   :  { %773 = vxpose.xlu0.c.b16.start.end [1/1] (short) (narrow) %v772_v57, 16 }
 0x42d   :  { %967 = vxpose.xlu1.c.b16.start.end [1/1] (short) (narrow) %v966_v59, 16 }
 0x481   :  { %v694_v61 = vpop.xlane.xlu0 %693 }
 0x482   :  { %2942 = vrcp.f32 %v694_v61 }
 0x485   :  { %v697_v63 = vpop.xlane.xlu1 %696 }
 0x486   :  { %2944 = vrcp.f32 %v697_v63  ;;  %v888_v5 = vpop.xlane.xlu0 %887 }
 0x489   :  { %v891_v0 = vpop.xlane.xlu1 %890 }
 0x48a   :  { %2946 = vrcp.f32 %v891_v0 }
 0x48b   :  { %2948 = vrcp.f32 %v888_v5 }
 0x48c   :  { %v781_v16 = vpop.trf.xlu0 }
 0x48f   :  { %v975_v58 = vpop.trf.xlu1  ;;  %v2943_v62 = vpop.eup %2942 }
 0x490   :  { %2753 = vmatmul.mubr.msk.bf16.vlgmr.msra.gmra.mxu0 %vm679_vm1, %v975_v58  ;;  %v700_v2 = vmul.f32 %v2943_v62, %v2931_v19 }
 0x491   :  { %2651 = vmatpush3.bf16.msra.mxu0 %v2883_v1  ;;  %1407 = vmatprep.mubr.bf16.mxu0 %v3343_v41  ;;  %v2889_v41 = vld [vmem:[#allocation8 + $0xa0] sm:$0xff]  }
 0x492   :  { %2652 = vmatprep.subr.bf16.mxu0 %v2884_v3 }
 0x493   :  { %v2945_v10 = vpop.eup %2944 }
 0x494   :  { %v701_v6 = vmul.f32 %v2945_v10, %v2933_v24 }
 0x495   :  { %2653 = vmatpush3.bf16.msra.mxu0 %v2885_v7 }
 0x496   :  { %v702_v11 = vpack.c.bf16 %v701_v6, %v700_v2  ;;  %2654 = vmatprep.subr.bf16.mxu0 %v2886_v8 }
 0x497   :  { %v2947_v19 = vpop.eup %2946 }
 0x498   :  { %2729 = vmatmul.mubr.msk.bf16.vlgmr.msra.gmra.mxu1 %vm679_vm1, %v702_v11  ;;  %v2949_v20 = vpop.eup %2948 }
 0x499   :  { %2733 = vmatpush3.bf16.msra.mxu1 %v3401_v9  ;;  %2734 = vmatprep.mubr.msk.bf16.mxu1 %vm3266_vm0, %v3265_v35  ;;  %v895_v9 = vmul.f32 %v2947_v19, %v3431_v30  ;;  %v894_v24 = vmul.f32 %v2949_v20, %v3426_v25  ;;  %v2870_v30 = vld [vmem:[#allocation7 + $0xe8] sm:$0xff]  }
 0x49a   :  { %2744 = vmatprep.subr.bf16.mxu1 %v3265_v35  ;;  %2655 = vmatpush3.bf16.msra.mxu0 %v2887_v13  ;;  %v2871_v25 = vld [vmem:[#allocation7 + $0xa8] sm:$0xff]  }
 0x49b   :  { %2656 = vmatprep.subr.bf16.mxu0 %v2888_v12  ;;  %v896_v27 = vpack.c.bf16 %v895_v9, %v894_v24 }
 0x49e   :  { %2657 = vmatpush3.bf16.msra.mxu0 %v2889_v41 }
 0x49f   :  { %2658 = vmatprep.subr.bf16.mxu0 %v2890_v15 }
 0x4a0   :  { %2735 = vmatmul.mubr.msk.bf16.vlgmr.msra.gmra.mxu1 %vm679_vm1, %v781_v16 }
 0x4a1   :  { %2745 = vmatpush3.bf16.msra.mxu1 %v3396_v4  ;;  %2746 = vmatprep.mubr.msk.bf16.mxu1 %vm3266_vm0, %v3265_v35  ;;  %v2869_v4 = vld [vmem:[#allocation7 + $0xb0] sm:$0xff]  }
 0x4a2   :  { %2622 = vmatprep.subr.bf16.mxu1 %v2866_v17  ;;  %2659 = vmatpush3.bf16.msra.mxu0 %v2891_v18 }
 0x4a3   :  { %2660 = vmatprep.subr.bf16.mxu0 %v2892_v21 }
 0x4a6   :  { %2661 = vmatpush3.bf16.msra.mxu0 %v2893_v22 }
 0x4a7   :  { %2662 = vmatprep.subr.bf16.mxu0 %v2894_v23 }
 0x4a8   :  { %2747 = vmatmul.mubr.msk.bf16.vlgmr.msra.gmra.mxu1 %vm679_vm1, %v896_v27 }
 0x4a9   :  { %2623 = vmatpush3.bf16.msra.mxu1 %v2867_v26  ;;  %1238 = vmatprep.mubr.bf16.mxu1 %v3334_v14  ;;  %v2875_v14 = vld [vmem:[#allocation7 + $0x98] sm:$0xff]  }
 0x4aa   :  { %2624 = vmatprep.subr.bf16.mxu1 %v2868_v28  ;;  %2663 = vmatpush3.bf16.msra.mxu0 %v2895_v29 }
 0x4ab   :  { %2664 = vmatprep.subr.bf16.mxu0 %v2896_v32 }
 0x4ad   :  { %2625 = vmatpush3.bf16.msra.mxu1 %v2869_v4 }
 0x4ae   :  { %2626 = vmatprep.subr.bf16.mxu1 %v2870_v30  ;;  %2665 = vmatpush3.bf16.msra.mxu0 %v2897_v34 }
 0x4af   :  { %2776 = vmatprep.subr.bf16.mxu0 %v3265_v35 }
 0x4b1   :  { %2627 = vmatpush3.bf16.msra.mxu1 %v2871_v25  ;;  %1408 = vmatmul.mubr.bf16.vlgmr.msra.gmra.mxu0 %v3349_v51  ;;  %v2880_v51 = vld [vmem:[#allocation7 + $0xc0] sm:$0xff]  }
 0x4b2   :  { %2628 = vmatprep.subr.bf16.mxu1 %v2872_v36  ;;  %1415 = vmatprep.mubr.bf16.mxu0 %v3351_v52 }
 0x4b5   :  { %2629 = vmatpush3.bf16.msra.mxu1 %v2873_v37 }
 0x4b6   :  { %2630 = vmatprep.subr.bf16.mxu1 %v2874_v38 }
 0x4b9   :  { %2631 = vmatpush3.bf16.msra.mxu1 %v2875_v14  ;;  %1416 = vmatmul.mubr.bf16.gmra.mxu0 %v3355_v55 }
 0x4ba   :  { %2632 = vmatprep.subr.bf16.mxu1 %v2876_v39  ;;  %2778 = vmatprep.mubr.msk.bf16.mxu0 %vm3266_vm0, %v3265_v35 }
 0x4bd   :  { %2633 = vmatpush3.bf16.msra.mxu1 %v2877_v40 }
 0x4be   :  { %2634 = vmatprep.subr.bf16.mxu1 %v2878_v42 }
 0x4c1   :  { %2635 = vmatpush3.bf16.msra.mxu1 %v2879_v44 }
 0x4c2   :  { %2636 = vmatprep.subr.bf16.mxu1 %v2880_v51 }
 0x4c5   :  { %2637 = vmatpush3.bf16.msra.mxu1 %v2881_v45 }
 0x4c8   :  { %1239 = vmatmul.mubr.bf16.vlgmr.msra.gmra.mxu1 %v3337_v31 }
 0x4c9   :  { %1246 = vmatprep.mubr.bf16.mxu1 %v3339_v33 }
 0x4d0   :  { %1247 = vmatmul.mubr.bf16.gmra.mxu1 %v3345_v43 }
 0x550   :  { %v3459_v52 = vpop.f32.mrf.mxu0 }
 0x551   :  { %v3462_v55 = vmul.f32 0.70710677, %v3459_v52  ;;  %v3508_v39 = vmul.f32 0.5, %v3459_v52 }
 0x552   :  { %v2754_v46 = vpop.f32.mrf.mxu0 }
 0x553   :  { %v2308_v47 = vand.u32 2147483647, %v3462_v55  ;;  %vm2388_vm2 = vcmp.lt.f32.partialorder %v3462_v55, 0.0 }
 0x554   :  { %v1023_v48 = vpop.f32.mrf.mxu0 }
 0x555   :  { %v2312_v49 = vmul.f32 0.3275911, %v2308_v47  ;;  %v3465_v50 = vmul.f32 0.70710677, %v1023_v48  ;;  %v2364_v1 = vmul.f32 %v2308_v47, %v2308_v47  ;;  %v3510_v40 = vmul.f32 0.5, %v1023_v48 }
 0x556   :  { %v2755_v53 = vpop.f32.mrf.mxu0 }
 0x557   :  { %v2316_v54 = vadd.f32 1.0, %v2312_v49  ;;  %v2310_v31 = vand.u32 2147483647, %v3465_v50  ;;  %v2368_v8 = vsub.f32 0.0, %v2364_v1  ;;  %vm2390_vm3 = vcmp.lt.f32.partialorder %v3465_v50, 0.0 }
 0x558   :  { %v3468_v56 = vpop.f32.mrf.mxu1 }
 0x559   :  { %v3471_v33 = vmul.f32 0.70710677, %v3468_v56  ;;  %2950 = vrcp.f32 %v2316_v54  ;;  %v2314_v57 = vmul.f32 0.3275911, %v2310_v31  ;;  %v2366_v12 = vmul.f32 %v2310_v31, %v2310_v31 }
 0x55a   :  { %v2730_v43 = vpop.f32.mrf.mxu1  ;;  %v2372_v15 = vmul.f32 1.442695, %v2368_v8  ;;  %v3521_v48 = vmul.f32 0.5, %v3468_v56 }
 0x55b   :  { %v1947_v59 = vand.u32 2147483647, %v3471_v33  ;;  %v2318_v61 = vadd.f32 1.0, %v2314_v57  ;;  %v2370_v23 = vsub.f32 0.0, %v2366_v12  ;;  %vm2027_vm4 = vcmp.lt.f32.partialorder %v3471_v33, 0.0 }
 0x55c   :  { %v3474_v60 = vpop.f32.mrf.mxu1 }
 0x55d   :  { %v1951_v63 = vmul.f32 0.3275911, %v1947_v59  ;;  %v3477_v0 = vmul.f32 0.70710677, %v3474_v60  ;;  %2952 = vrcp.f32 %v2318_v61  ;;  %v2003_v17 = vmul.f32 %v1947_v59, %v1947_v59 }
 0x55e   :  { %v2731_v3 = vpop.f32.mrf.mxu1  ;;  %v2376_v38 = vmul.f32 1.442695, %v2370_v23 }
 0x55f   :  { %v1955_v58 = vadd.f32 1.0, %v1951_v63  ;;  %v1949_v62 = vand.u32 2147483647, %v3477_v0  ;;  %v2007_v27 = vsub.f32 0.0, %v2003_v17  ;;  %vm2029_vm5 = vcmp.lt.f32.partialorder %v3477_v0, 0.0 }
 0x560   :  { %v3480_v5 = vpop.f32.mrf.mxu1 }
 0x561   :  { %2954 = vrcp.f32 %v1955_v58  ;;  %v1953_v7 = vmul.f32 0.3275911, %v1949_v62  ;;  %v3483_v10 = vmul.f32 0.70710677, %v3480_v5  ;;  %v2005_v4 = vmul.f32 %v1949_v62, %v1949_v62 }
 0x562   :  { %v2736_v2 = vpop.f32.mrf.mxu1  ;;  %v2011_v44 = vmul.f32 1.442695, %v2007_v27 }
 0x563   :  { %v1957_v6 = vadd.f32 1.0, %v1953_v7  ;;  %v2067_v11 = vand.u32 2147483647, %v3483_v10  ;;  %v2009_v49 = vsub.f32 0.0, %v2005_v4  ;;  %vm2147_vm6 = vcmp.lt.f32.partialorder %v3483_v10, 0.0 }
 0x564   :  { %v3486_v13 = vpop.f32.mrf.mxu1 }
 0x565   :  { %2956 = vrcp.f32 %v1957_v6  ;;  %v3489_v41 = vmul.f32 0.70710677, %v3486_v13  ;;  %v2071_v18 = vmul.f32 0.3275911, %v2067_v11  ;;  %v2123_v53 = vmul.f32 %v2067_v11, %v2067_v11 }
 0x566   :  { %v3491_v16 = vpop.eup %2950  ;;  %v2737_v19 = vpop.f32.mrf.mxu1  ;;  %2958 = vpow2.f32 %v2372_v15  ;;  %v2015_v7 = vmul.f32 1.442695, %v2009_v49  ;;  %v3530_v15 = vmul.f32 0.5, %v3474_v60 }
 0x567   :  { %v2069_v21 = vand.u32 2147483647, %v3489_v41  ;;  %v2328_v20 = vmul.f32 1.0614054, %v3491_v16  ;;  %v2075_v9 = vadd.f32 1.0, %v2071_v18  ;;  %v2127_v8 = vsub.f32 0.0, %v2123_v53 }
 0x568   :  { %v3495_v22 = vpop.f32.mrf.mxu1  ;;  %vm2149_vm7 = vcmp.lt.f32.partialorder %v3489_v41, 0.0 }
 0x569   :  { %v2073_v24 = vmul.f32 0.3275911, %v2069_v21  ;;  %v3498_v26 = vmul.f32 0.70710677, %v3495_v22  ;;  %2960 = vrcp.f32 %v2075_v9  ;;  %v2332_v29 = vadd.f32 -1.4531521, %v2328_v20 }
 0x56a   :  { %v2748_v28 = vpop.f32.mrf.mxu1  ;;  %v3500_v32 = vpop.eup %2952  ;;  %v2125_v59 = vmul.f32 %v2069_v21, %v2069_v21 }
 0x56b   :  { %v2077_v30 = vadd.f32 1.0, %v2073_v24  ;;  %v2187_v34 = vand.u32 2147483647, %v3498_v26  ;;  %v2336_v36 = vmul.f32 %v3491_v16, %v2332_v29  ;;  %v2330_v37 = vmul.f32 1.0614054, %v3500_v32 }
 0x56c   :  { %v3503_v25 = vpop.f32.mrf.mxu1  ;;  %v2129_v18 = vsub.f32 0.0, %v2125_v59  ;;  %v2131_v28 = vmul.f32 1.442695, %v2127_v8  ;;  %vm2267_vm8 = vcmp.lt.f32.partialorder %v3498_v26, 0.0 }
 0x56d   :  { %2962 = vrcp.f32 %v2077_v30  ;;  %v2191_v14 = vmul.f32 0.3275911, %v2187_v34  ;;  %v3515_v51 = vmul.f32 0.70710677, %v3503_v25  ;;  %v2340_v46 = vadd.f32 1.4214138, %v2336_v36 }
 0x56e   :  { %v3512_v42 = vpop.eup %2954  ;;  %v2749_v45 = vpop.f32.mrf.mxu1  ;;  %v2334_v43 = vadd.f32 -1.4531521, %v2330_v37  ;;  %2964 = vpow2.f32 %v2376_v38  ;;  %v2243_v2 = vmul.f32 %v2187_v34, %v2187_v34  ;;  %v2135_v37 = vmul.f32 1.442695, %v2129_v18 }
 0x56f   :  { %v1967_v47 = vmul.f32 1.0614054, %v3512_v42  ;;  %v2195_v54 = vadd.f32 1.0, %v2191_v14  ;;  %v2189_v31 = vand.u32 2147483647, %v3515_v51  ;;  %v2344_v52 = vmul.f32 %v3491_v16, %v2340_v46 }
 0x570   :  { %v2338_v3 = vmul.f32 %v3500_v32, %v2334_v43  ;;  %v2247_v29 = vsub.f32 0.0, %v2243_v2  ;;  %vm2269_vm9 = vcmp.lt.f32.partialorder %v3515_v51, 0.0 }
 0x571   :  { %v1971_v57 = vadd.f32 -1.4531521, %v1967_v47  ;;  %2966 = vrcp.f32 %v2195_v54  ;;  %v2193_v63 = vmul.f32 0.3275911, %v2189_v31  ;;  %v2348_v1 = vadd.f32 -0.28449672, %v2344_v52  ;;  %v3552_v8 = vpop.f32.mrf.mxu0 }
 0x572   :  { %v3523_v61 = vpop.eup %2956  ;;  %2968 = vpow2.f32 %v2011_v44  ;;  %v2342_v11 = vadd.f32 1.4214138, %v2338_v3  ;;  %v2245_v21 = vmul.f32 %v2189_v31, %v2189_v31  ;;  %v2251_v54 = vmul.f32 1.442695, %v2247_v29 }
 0x573   :  { %v1975_v58 = vmul.f32 %v3512_v42, %v1971_v57  ;;  %v1969_v62 = vmul.f32 1.0614054, %v3523_v61  ;;  %v2197_v6 = vadd.f32 1.0, %v2193_v63  ;;  %v2352_v56 = vmul.f32 %v3491_v16, %v2348_v1  ;;  %v2959_v19 = vpop.eup %2958 }
 0x574   :  { %v2346_v9 = vmul.f32 %v3500_v32, %v2342_v11  ;;  %v2249_v44 = vsub.f32 0.0, %v2245_v21 }
 0x575   :  { %v1979_v12 = vadd.f32 1.4214138, %v1975_v58  ;;  %v1973_v17 = vadd.f32 -1.4531521, %v1969_v62  ;;  %2970 = vrcp.f32 %v2197_v6  ;;  %v2356_v20 = vadd.f32 0.2548296, %v2352_v56 }
 0x576   :  { %v3534_v23 = vpop.eup %2960  ;;  %2972 = vpow2.f32 %v2015_v7  ;;  %v2350_v30 = vadd.f32 -0.28449672, %v2346_v9  ;;  %v2255_v58 = vmul.f32 1.442695, %v2249_v44 }
 0x577   :  { %v1983_v24 = vmul.f32 %v3512_v42, %v1979_v12  ;;  %v1977_v27 = vmul.f32 %v3523_v61, %v1973_v17  ;;  %v2087_v60 = vmul.f32 1.0614054, %v3534_v23  ;;  %v2360_v4 = vmul.f32 %v3491_v16, %v2356_v20 }
 0x578   :  { %v2354_v46 = vmul.f32 %v3500_v32, %v2350_v30  ;;  %2974 = vpow2.f32 %v2131_v28  ;;  %v3562_v28 = vpop.f32.mrf.mxu0 }
 0x579   :  { %v1987_v34 = vadd.f32 -0.28449672, %v1983_v24  ;;  %v1981_v36 = vadd.f32 1.4214138, %v1977_v27  ;;  %v2091_v14 = vadd.f32 -1.4531521, %v2087_v60  ;;  %v2380_v45 = vmul.f32 %v2959_v19, %v2360_v4 }
 0x57a   :  { %v3540_v38 = vpop.eup %2962  ;;  %v2358_v52 = vadd.f32 0.2548296, %v2354_v46  ;;  %2976 = vpow2.f32 %v2135_v37 }
 0x57b   :  { %v1991_v47 = vmul.f32 %v3512_v42, %v1987_v34  ;;  %v1985_v49 = vmul.f32 %v3523_v61, %v1981_v36  ;;  %v2089_v53 = vmul.f32 1.0614054, %v3540_v38  ;;  %v2095_v16 = vmul.f32 %v3534_v23, %v2091_v14  ;;  %v2965_v43 = vpop.eup %2964 }
 0x57c   :  { %v2384_v31 = vsub.f32 1.0, %v2380_v45  ;;  %v2362_v7 = vmul.f32 %v3500_v32, %v2358_v52  ;;  %2978 = vpow2.f32 %v2251_v54  ;;  %v3090_v54 = vld [vmem:[#allocation5 + $0x20] sm:$0xff]  ;;  %v3574_v52 = vpop.f32.mrf.mxu0 }
 0x57d   :  { %v1995_v57 = vadd.f32 0.2548296, %v1991_v47  ;;  %v1989_v59 = vadd.f32 -0.28449672, %v1985_v49  ;;  %v2093_v63 = vadd.f32 -1.4531521, %v2089_v53  ;;  %2980 = vpow2.f32 %v2255_v58 }
 0x57e   :  { %v3548_v1 = vpop.eup %2966  ;;  %v2099_v3 = vadd.f32 1.4214138, %v2095_v16  ;;  %v2392_v62 = vsub.f32 0.0, %v2384_v31  ;;  %v2382_v19 = vmul.f32 %v2965_v43, %v2362_v7 }
 0x57f   :  { %v2969_v2 = vpop.eup %2968  ;;  %v1999_v6 = vmul.f32 %v3512_v42, %v1995_v57  ;;  %v1993_v56 = vmul.f32 %v3523_v61, %v1989_v59  ;;  %v2097_v11 = vmul.f32 %v3540_v38, %v2093_v63  ;;  %v2207_v12 = vmul.f32 1.0614054, %v3548_v1 }
 0x580   :  { %v2103_v17 = vmul.f32 %v3534_v23, %v2099_v3  ;;  %v2396_v18 = vsel %vm2388_vm2, %v2392_v62, %v2384_v31  ;;  %v2386_v27 = vsub.f32 1.0, %v2382_v19 }
 0x581   :  { %v2019_v21 = vmul.f32 %v2969_v2, %v1999_v6  ;;  %v1997_v32 = vadd.f32 0.2548296, %v1993_v56  ;;  %v2101_v20 = vadd.f32 1.4214138, %v2097_v11  ;;  %v2211_v9 = vadd.f32 -1.4531521, %v2207_v12 }
 0x582   :  { %v2107_v42 = vadd.f32 -0.28449672, %v2103_v17  ;;  %v2400_v24 = vadd.f32 1.0, %v2396_v18  ;;  %v3564_v60 = vpop.eup %2970  ;;  %v2394_v44 = vsub.f32 0.0, %v2386_v27  ;;  %v2059_v12 = vmul.f32 0.5, %v3480_v5 }
 0x583   :  { %v2023_v29 = vsub.f32 1.0, %v2019_v21  ;;  %v2001_v4 = vmul.f32 %v3523_v61, %v1997_v32  ;;  %v2105_v55 = vmul.f32 %v3540_v38, %v2101_v20  ;;  %v2215_v30 = vmul.f32 %v3548_v1, %v2211_v9  ;;  %v2973_v34 = vpop.eup %2972  ;;  %v3584_v21 = vpop.f32.mrf.mxu0 }
 0x584   :  { %v2111_v36 = vmul.f32 %v3534_v23, %v2107_v42  ;;  %v2209_v37 = vmul.f32 1.0614054, %v3564_v60  ;;  %v2404_v14 = vmul.f32 %v2400_v24, %v3508_v39  ;;  %v2398_v31 = vsel %vm2390_vm3, %v2394_v44, %v2386_v27  ;;  %v3091_v42 = vld [vmem:[#allocation2] sm:$0xff] }
 0x585   :  { %v2031_v45 = vsub.f32 0.0, %v2023_v29  ;;  %v2021_v46 = vmul.f32 %v2973_v34, %v2001_v4  ;;  %v2109_v47 = vadd.f32 -0.28449672, %v2105_v55  ;;  %v2219_v49 = vadd.f32 1.4214138, %v2215_v30  ;;  %v2975_v63 = vpop.eup %2974  ;;  %v2672_v4 = vpop.f32.mrf.mxu0 }
 0x586   :  { %v2115_v53 = vadd.f32 0.2548296, %v2111_v36  ;;  %v2213_v16 = vadd.f32 -1.4531521, %v2209_v37  ;;  %v2408_v61 = vadd.f32 %v3090_v54, %v2404_v14  ;;  %v2402_v56 = vadd.f32 1.0, %v2398_v31  ;;  %v3093_v31 = vld [vmem:[#allocation5 + $0x30] sm:$0xff] }
 0x587   :  { %v2035_v43 = vsel %vm2027_vm4, %v2031_v45, %v2023_v29  ;;  %v2025_v57 = vsub.f32 1.0, %v2021_v46  ;;  %v2113_v39 = vmul.f32 %v3540_v38, %v2109_v47  ;;  %v2223_v59 = vmul.f32 %v3548_v1, %v2219_v49  ;;  %v2977_v11 = vpop.eup %2976 }
 0x588   :  { %v2039_v3 = vadd.f32 1.0, %v2035_v43  ;;  %v2119_v58 = vmul.f32 %v3534_v23, %v2115_v53  ;;  %v2217_v62 = vmul.f32 %v3564_v60, %v2213_v16  ;;  %v2638_v7 = vpop.f32.mrf.mxu1  ;;  %2982 = vtanh.f32 %v2408_v61  ;;  %v3092_v53 = vld [vmem:[#allocation2 + $0x10] sm:$0xff]  ;;  %v2673_v43 = vpop.f32.mrf.mxu0 }
 0x589   :  { %v2033_v50 = vsub.f32 0.0, %v2025_v57  ;;  %v2117_v2 = vadd.f32 0.2548296, %v2113_v39  ;;  %v2227_v6 = vadd.f32 -0.28449672, %v2223_v59  ;;  %v2979_v55 = vpop.eup %2978  ;;  %v3624_v26 = vadd.f32 %v2673_v43, %v2672_v4  ;;  %v2903_v43 = vld [vmem:[#allocation10 + $0x50] sm:$0xff]  }
 0x58a   :  { %v2043_v33 = vmul.f32 %v2039_v3, %v3521_v48  ;;  %v2139_v17 = vmul.f32 %v2975_v63, %v2119_v58  ;;  %v2221_v18 = vadd.f32 1.4214138, %v2217_v62  ;;  %v2639_v19 = vpop.f32.mrf.mxu1  ;;  %v2981_v45 = vpop.eup %2980  ;;  %v3607_v3 = vadd.f32 %v3562_v28, %v3552_v8 }
 0x58b   :  { %v2037_v23 = vsel %vm2029_vm5, %v2033_v50, %v2025_v57  ;;  %v2121_v32 = vmul.f32 %v3540_v38, %v2117_v2  ;;  %v2231_v20 = vmul.f32 %v3548_v1, %v2227_v6  ;;  %v3590_v9 = vadd.f32 %v2639_v19, %v2638_v7  ;;  %v2675_v41 = vpop.f32.mrf.mxu0 }
 0x58c   :  { %v2047_v24 = vadd.f32 %v3091_v42, %v2043_v33  ;;  %v2041_v27 = vadd.f32 1.0, %v2037_v23  ;;  %v2143_v48 = vsub.f32 1.0, %v2139_v17  ;;  %v2225_v5 = vmul.f32 %v3564_v60, %v2221_v18  ;;  %v2641_v29 = vpop.f32.mrf.mxu1  ;;  %v3094_v17 = vld [vmem:[#allocation5] sm:$0xff]  ;;  %v2898_v42 = vld [vmem:[#allocation10 + $0x78] sm:$0xff]  }
 0x58d   :  { %v2141_v30 = vmul.f32 %v2977_v11, %v2121_v32  ;;  %v2235_v34 = vadd.f32 0.2548296, %v2231_v20  ;;  %v1255_v0 = vmul.f32 %v3590_v9, %v3590_v9  ;;  %v2406_v38 = vmul.f32 %v2402_v56, %v3510_v40  ;;  %2756 = vmatprep.subr.bf16.mxu1 %v2898_v42 }
 0x58e   :  { %2984 = vtanh.f32 %v2047_v24  ;;  %v2045_v36 = vmul.f32 %v2041_v27, %v3530_v15  ;;  %v2151_v37 = vsub.f32 0.0, %v2143_v48  ;;  %v2229_v14 = vadd.f32 -0.28449672, %v2225_v5  ;;  %v2642_v44 = vpop.f32.mrf.mxu1  ;;  %v3095_v24 = vld [vmem:[#allocation5 + $0x10] sm:$0xff]  ;;  %2757 = vmatpush3.bf16.msra.mxu1 %v2898_v42 }
 0x58f   :  { %v2145_v46 = vsub.f32 1.0, %v2141_v30  ;;  %v2239_v47 = vmul.f32 %v3548_v1, %v2235_v34  ;;  %v3599_v49 = vadd.f32 %v2642_v44, %v2641_v29  ;;  %1259 = vadd.xlane.f32.xlu0 %v1255_v0  ;;  %v2410_v15 = vadd.f32 %v3093_v31, %v2406_v38  ;;  %v2899_v38 = vld [vmem:[#allocation10 + $0x70] sm:$0xff]  }
 0x590   :  { %v2049_v16 = vadd.f32 %v3092_v53, %v2045_v36  ;;  %v2155_v54 = vsel %vm2147_vm6, %v2151_v37, %v2143_v48  ;;  %v2233_v40 = vmul.f32 %v3564_v60, %v2229_v14  ;;  %v2644_v61 = vpop.f32.mrf.mxu1  ;;  %v2061_v2 = vmul.f32 0.5, %v3486_v13  ;;  %v3096_v36 = vld [vmem:[#allocation2 + $0x20] sm:$0xff]  ;;  %2758 = vmatprep.subr.bf16.mxu1 %v2899_v38  ;;  %v2900_v53 = vld [vmem:[#allocation10 + $0x68] sm:$0xff]  }
 0x591   :  { %v2159_v57 = vadd.f32 1.0, %v2155_v54  ;;  %v2153_v39 = vsub.f32 0.0, %v2145_v46  ;;  %v2259_v59 = vmul.f32 %v2979_v55, %v2239_v47  ;;  %v1256_v10 = vmul.f32 %v3599_v49, %v3599_v49  ;;  %v2676_v55 = vpop.f32.mrf.mxu0  ;;  %v3097_v54 = vld [vmem:[#allocation2 + $0x30] sm:$0xff] }
 0x592   :  { %2986 = vtanh.f32 %v2049_v16  ;;  %v2237_v1 = vadd.f32 0.2548296, %v2233_v40  ;;  %v2645_v63 = vpop.f32.mrf.mxu1  ;;  %v3618_v13 = vadd.f32 %v3584_v21, %v3574_v52  ;;  %v2179_v48 = vmul.f32 0.5, %v3495_v22  ;;  %2759 = vmatpush3.bf16.msra.mxu1 %v2899_v38 }
 0x593   :  { %v2163_v58 = vmul.f32 %v2159_v57, %v2059_v12  ;;  %v2157_v62 = vsel %vm2149_vm7, %v2153_v39, %v2145_v46  ;;  %v2263_v7 = vsub.f32 1.0, %v2259_v59  ;;  %v3609_v50 = vadd.f32 %v2645_v63, %v2644_v61  ;;  %1261 = vadd.xlane.f32.xlu1 %v1256_v10  ;;  %2760 = vmatprep.subr.bf16.mxu1 %v2900_v53  ;;  %v2904_v39 = vld [vmem:[#allocation10 + $0x48] sm:$0xff]   ;;  %v2905_v10 = vld [vmem:[#allocation10 + $0x40] sm:$0xff]  }
 0x594   :  { %v2161_v6 = vadd.f32 1.0, %v2157_v62  ;;  %v2241_v56 = vmul.f32 %v3564_v60, %v2237_v1  ;;  %v2647_v11 = vpop.f32.mrf.mxu1  ;;  %2988 = vtanh.f32 %v2410_v15  ;;  %v1424_v60 = vmul.f32 %v3607_v3, %v3607_v3  ;;  %v2902_v15 = vld [vmem:[#allocation10 + $0x58] sm:$0xff]  }
 0x595   :  { %v2983_v33 = vpop.eup %2982  ;;  %v2167_v18 = vadd.f32 %v3094_v17, %v2163_v58  ;;  %v2271_v8 = vsub.f32 0.0, %v2263_v7  ;;  %v1257_v28 = vmul.f32 %v3609_v50, %v3609_v50  ;;  %v1425_v4 = vmul.f32 %v3618_v13, %v3618_v13 }
 0x596   :  { %v2165_v12 = vmul.f32 %v2161_v6, %v2061_v2  ;;  %v2261_v19 = vmul.f32 %v2981_v45, %v2241_v56  ;;  %v2648_v23 = vpop.f32.mrf.mxu1  ;;  %2417 = vst [vmem:[#allocation12 + $0x20] sm:$0xff] %v2983_v33  ;;  %v3632_v22 = vadd.f32 %v2676_v55, %v2675_v41  ;;  %v1426_v0 = vmul.f32 %v3624_v26, %v3624_v26 }
 0x597   :  { %2990 = vtanh.f32 %v2167_v18  ;;  %v2275_v32 = vsel %vm2267_vm8, %v2271_v8, %v2263_v7  ;;  %v3622_v20 = vadd.f32 %v2648_v23, %v2647_v11  ;;  %1263 = vadd.xlane.f32.xlu0 %v1257_v28  ;;  %v2181_v44 = vmul.f32 0.5, %v3503_v25  ;;  %2761 = vmatpush3.bf16.msra.mxu1 %v2900_v53  ;;  %v2901_v25 = vld [vmem:[#allocation10 + $0x60] sm:$0xff]  }
 0x598   :  { %v2169_v27 = vadd.f32 %v3095_v24, %v2165_v12  ;;  %v2279_v5 = vadd.f32 1.0, %v2275_v32  ;;  %v2265_v29 = vsub.f32 1.0, %v2261_v19  ;;  %v1427_v47 = vmul.f32 %v3632_v22, %v3632_v22  ;;  %2762 = vmatprep.subr.bf16.mxu1 %v2901_v25 }
 0x599   :  { %v1258_v52 = vmul.f32 %v3622_v20, %v3622_v20 }
 0x59a   :  { %2992 = vtanh.f32 %v2169_v27  ;;  %v2283_v21 = vmul.f32 %v2279_v5, %v2179_v48  ;;  %v2273_v30 = vsub.f32 0.0, %v2265_v29 }
 0x59b   :  { %v2985_v34 = vpop.eup %2984  ;;  %1265 = vadd.xlane.f32.xlu1 %v1258_v52  ;;  %1428 = vadd.xlane.f32.xlu0 %v1424_v60 }
 0x59c   :  { %2055 = vst [vmem:[#allocation11] sm:$0xff] %v2985_v34  ;;  %v2287_v37 = vadd.f32 %v3096_v36, %v2283_v21  ;;  %v2277_v14 = vsel %vm2269_vm9, %v2273_v30, %v2265_v29  ;;  %2763 = vmatpush3.bf16.msra.mxu1 %v2901_v25 }
 0x59d   :  { %v2281_v45 = vadd.f32 1.0, %v2277_v14  ;;  %2764 = vmatprep.subr.bf16.mxu1 %v2902_v15 }
 0x59e   :  { %2994 = vtanh.f32 %v2287_v37 }
 0x59f   :  { %v2987_v51 = vpop.eup %2986  ;;  %v2285_v46 = vmul.f32 %v2281_v45, %v2181_v44  ;;  %1430 = vadd.xlane.f32.xlu1 %v1425_v4  ;;  %1432 = vadd.xlane.f32.xlu0 %v1426_v0 }
 0x5a0   :  { %2057 = vst [vmem:[#allocation11 + $0x10] sm:$0xff] %v2987_v51  ;;  %2765 = vmatpush3.bf16.msra.mxu1 %v2902_v15 }
 0x5a1   :  { %v2989_v16 = vpop.eup %2988  ;;  %v2289_v40 = vadd.f32 %v3097_v54, %v2285_v46  ;;  %2766 = vmatprep.subr.bf16.mxu1 %v2903_v43 }
 0x5a2   :  { %2419 = vst [vmem:[#allocation12 + $0x30] sm:$0xff] %v2989_v16 }
 0x5a3   :  { %2996 = vtanh.f32 %v2289_v40  ;;  %1434 = vadd.xlane.f32.xlu1 %v1427_v47 }
 0x5a4   :  { %v2991_v61 = vpop.eup %2990  ;;  %2767 = vmatpush3.bf16.msra.mxu1 %v2903_v43 }
 0x5a5   :  { %2175 = vst [vmem:[#allocation12] sm:$0xff] %v2991_v61  ;;  %2768 = vmatprep.subr.bf16.mxu1 %v2904_v39 }
 0x5a7   :  { %v2993_v31 = vpop.eup %2992 }
 0x5a8   :  { %2177 = vst [vmem:[#allocation12 + $0x10] sm:$0xff] %v2993_v31  ;;  %2769 = vmatpush3.bf16.msra.mxu1 %v2904_v39 }
 0x5a9   :  { %2770 = vmatprep.subr.bf16.mxu1 %v2905_v10 }
 0x5ab   :  { %v2995_v57 = vpop.eup %2994 }
 0x5ac   :  { %2296 = vst [vmem:[#allocation11 + $0x20] sm:$0xff] %v2995_v57  ;;  %2771 = vmatpush3.bf16.msra.mxu1 %v2905_v10 }
 0x5ad   :  { %2794 = vmatprep.subr.bf16.mxu1 %v3265_v35 }
 0x5b0   :  { %v2997_v59 = vpop.eup %2996 }
 0x5b1   :  { %2298 = vst [vmem:[#allocation11 + $0x30] sm:$0xff] %v2997_v59 }
 0x618   :  { %v1260_v1 = vpop.xlane.xlu0 %1259 }
 0x619   :  { %v1267_v63 = vmax.f32 %v1260_v1, 1e-24 }
 0x61b   :  { %2998 = vrsqrt.f32 %v1267_v63 }
 0x61c   :  { %v1262_v58 = vpop.xlane.xlu1 %1261 }
 0x61d   :  { %v1268_v62 = vmax.f32 %v1262_v58, 1e-24 }
 0x61f   :  { %3000 = vrsqrt.f32 %v1268_v62 }
 0x620   :  { %v1264_v7 = vpop.xlane.xlu0 %1263 }
 0x621   :  { %v1269_v2 = vmax.f32 %v1264_v7, 1e-24 }
 0x623   :  { %3002 = vrsqrt.f32 %v1269_v2 }
 0x624   :  { %v1266_v6 = vpop.xlane.xlu1 %1265  ;;  %v1429_v56 = vpop.xlane.xlu0 %1428 }
 0x625   :  { %v1270_v11 = vmax.f32 %v1266_v6, 1e-24  ;;  %v1436_v41 = vmax.f32 %v1429_v56, 1e-24 }
 0x627   :  { %3004 = vrsqrt.f32 %v1270_v11 }
 0x628   :  { %v1431_v33 = vpop.xlane.xlu1 %1430  ;;  %3006 = vrsqrt.f32 %v1436_v41  ;;  %v1433_v17 = vpop.xlane.xlu0 %1432 }
 0x629   :  { %v1437_v18 = vmax.f32 %v1431_v33, 1e-24  ;;  %v1438_v8 = vmax.f32 %v1433_v17, 1e-24  ;;  %v2999_v28 = vpop.eup %2998 }
 0x62a   :  { %v1275_v23 = vmul.f32 %v2999_v28, %v3590_v9 }
 0x62b   :  { %3008 = vrsqrt.f32 %v1437_v18 }
 0x62c   :  { %v3001_v12 = vpop.eup %3000  ;;  %v1435_v19 = vpop.xlane.xlu1 %1434  ;;  %3010 = vrsqrt.f32 %v1438_v8 }
 0x62d   :  { %v1276_v60 = vmul.f32 %v3001_v12, %v3599_v49  ;;  %v1439_v32 = vmax.f32 %v1435_v19, 1e-24 }
 0x62f   :  { %v1448_v42 = vpack.c.bf16 %v1276_v60, %v1275_v23  ;;  %3012 = vrsqrt.f32 %v1439_v32 }
 0x630   :  { %v3003_v24 = vpop.eup %3002 }
 0x631   :  { %2772 = vmatprep.mubr.bf16.mxu1 %v1448_v42  ;;  %v1277_v5 = vmul.f32 %v3003_v24, %v3609_v50 }
 0x634   :  { %v3005_v27 = vpop.eup %3004 }
 0x635   :  { %v3007_v48 = vpop.eup %3006  ;;  %v1278_v29 = vmul.f32 %v3005_v27, %v3622_v20 }
 0x636   :  { %v1444_v52 = vmul.f32 %v3007_v48, %v3607_v3 }
 0x637   :  { %v3644_v55 = vpack.c.bf16 %v1278_v29, %v1277_v5 }
 0x638   :  { %v3009_v21 = vpop.eup %3008 }
 0x639   :  { %v3011_v30 = vpop.eup %3010  ;;  %2773 = vmatmul.mubr.bf16.vlgmr.msra.gmra.mxu1 %v3644_v55  ;;  %v1445_v9 = vmul.f32 %v3009_v21, %v3618_v13 }
 0x63a   :  { %2796 = vmatprep.mubr.msk.bf16.mxu1 %vm3266_vm0, %v3265_v35  ;;  %v1446_v34 = vmul.f32 %v3011_v30, %v3624_v26 }
 0x63b   :  { %v3651_v49 = vpack.c.bf16 %v1445_v9, %v1444_v52 }
 0x63c   :  { %v3013_v50 = vpop.eup %3012 }
 0x63d   :  { %2777 = vmatpush3.bf16.xpose.msra.mxu0 %v3651_v49  ;;  %v1447_v20 = vmul.f32 %v3013_v50, %v3632_v22 }
 0x63e   :  { %2782 = vmatprep.subr.bf16.mxu0 %v3265_v35 }
 0x63f   :  { %v1451_v3 = vpack.c.bf16 %v1447_v20, %v1446_v34 }
 0x641   :  { %2795 = vmatpush3.bf16.xpose.msra.mxu1 %v1451_v3 }
 0x642   :  { %2806 = vmatprep.subr.bf16.mxu1 %v3265_v35 }
 0x6f9   :  { %v2774_v4 = vpop.f32.mrf.mxu1 }
 0x6fb   :  { %v1534_v13 = vpop.f32.mrf.mxu1 }
 0x6fd   :  { %v2775_v0 = vpop.f32.mrf.mxu1 }
 0x6fe   :  { %v1550_v38 = vpack.c.bf16 %v2775_v0, %v2774_v4 }
 0x6ff   :  { %v1537_v36 = vpop.f32.mrf.mxu1 }
 0x700   :  { %v1549_v37 = vpack.c.bf16 %v1537_v36, %v1534_v13  ;;  %2797 = vmatmul.mubr.bf16.vlgmr.msra.gmra.mxu1 %v1550_v38 }
 0x701   :  { %2807 = vmatpush3.bf16.msra.mxu1 %v1451_v3  ;;  %2808 = vmatprep.mubr.msk.bf16.mxu1 %vm3266_vm0, %v3265_v35 }
 0x702   :  { %2779 = vmatmul.mubr.bf16.vlgmr.msra.gmra.mxu0 %v1549_v37 }
 0x703   :  { %2783 = vmatpush3.bf16.msra.mxu0 %v1448_v42  ;;  %2784 = vmatprep.mubr.msk.bf16.mxu0 %vm3266_vm0, %v3265_v35 }
 0x704   :  { %2788 = vmatprep.subr.bf16.mxu0 %v3265_v35 }
 0x7c0   :  { %v1779_v26 = vpop.f32.mrf.mxu1 }
 0x7c1   :  { %v1786_v46 = vsel %vm679_vm1, %v1779_v26, -inf }
 0x7c2   :  { %v1585_v22 = vpop.f32.mrf.mxu0  ;;  %v2798_v14 = vpop.f32.mrf.mxu1 }
 0x7c3   :  { %v1592_v44 = vsel %vm679_vm1, %v1585_v22, -inf }
 0x7c4   :  { %1593 = vmax.xlane.f32.xlu0 %v1592_v44  ;;  %v2780_v45 = vpop.f32.mrf.mxu0  ;;  %v1782_v51 = vpop.f32.mrf.mxu1 }
 0x7c5   :  { %v1789_v47 = vsel %vm679_vm1, %v1782_v51, -inf }
 0x7c6   :  { %v1588_v53 = vpop.f32.mrf.mxu0  ;;  %v2799_v16 = vpop.f32.mrf.mxu1  ;;  %v1853_v54 = vmax.f32 %v1786_v46, %v1789_v47 }
 0x7c7   :  { %v1595_v40 = vsel %vm679_vm1, %v1588_v53, -inf }
 0x7c8   :  { %1596 = vmax.xlane.f32.xlu1 %v1595_v40  ;;  %v1659_v25 = vmax.f32 %v1592_v44, %v1595_v40  ;;  %v2781_v61 = vpop.f32.mrf.mxu0  ;;  %1787 = vmax.xlane.f32.xlu0 %v1786_v46  ;;  %v1854_v15 = vrot.slane %v1853_v54, 4 }
 0x7ca   :  { %v1660_v31 = vrot.slane %v1659_v25, 4  ;;  %v1855_v57 = vmax.f32 %v1853_v54, %v1854_v15 }
 0x7cc   :  { %1790 = vmax.xlane.f32.xlu1 %v1789_v47  ;;  %v1661_v43 = vmax.f32 %v1659_v25, %v1660_v31  ;;  %v1856_v59 = vrot.slane %v1855_v57, 2 }
 0x7ce   :  { %v1662_v39 = vrot.slane %v1661_v43, 2  ;;  %v1857_v1 = vmax.f32 %v1855_v57, %v1856_v59 }
 0x7d0   :  { %v1663_v10 = vmax.f32 %v1661_v43, %v1662_v39  ;;  %v1858_v58 = vrot.slane %v1857_v1, 1 }
 0x7d2   :  { %v1664_v63 = vrot.slane %v1663_v10, 1  ;;  %v1859_v7 = vmax.f32 %v1857_v1, %v1858_v58 }
 0x7d4   :  { %v1665_v62 = vmax.f32 %v1663_v10, %v1664_v63  ;;  %v1860_v56 = vsub.f32 %v1779_v26, %v1859_v7  ;;  %v1861_v41 = vsub.f32 %v1782_v51, %v1859_v7 }
 0x7d6   :  { %v1666_v2 = vsub.f32 %v1585_v22, %v1665_v62  ;;  %v1667_v6 = vsub.f32 %v1588_v53, %v1665_v62  ;;  %v1862_v17 = vmul.f32 1.442695, %v1860_v56  ;;  %v1864_v18 = vmul.f32 1.442695, %v1861_v41 }
 0x7d8   :  { %v1668_v11 = vmul.f32 1.442695, %v1666_v2  ;;  %v1670_v33 = vmul.f32 1.442695, %v1667_v6 }
 0x7da   :  { %3014 = vpow2.f32 %v1668_v11 }
 0x7db   :  { %3016 = vpow2.f32 %v1670_v33 }
 0x7dc   :  { %3018 = vpow2.f32 %v1862_v17 }
 0x7dd   :  { %3020 = vpow2.f32 %v1864_v18 }
 0x7e7   :  { %v3015_v29 = vpop.eup %3014 }
 0x7e8   :  { %v3017_v52 = vpop.eup %3016  ;;  %v1672_v9 = vsel %vm679_vm1, %v3015_v29, 0.0 }
 0x7e9   :  { %v3019_v21 = vpop.eup %3018  ;;  %v1673_v34 = vsel %vm679_vm1, %v3017_v52, 0.0 }
 0x7ea   :  { %v3021_v30 = vpop.eup %3020  ;;  %v1674_v3 = vadd.f32 %v1673_v34, %v1672_v9  ;;  %v1866_v4 = vsel %vm679_vm1, %v3019_v21, 0.0 }
 0x7eb   :  { %v1867_v13 = vsel %vm679_vm1, %v3021_v30, 0.0 }
 0x7ec   :  { %v1868_v36 = vadd.f32 %v1867_v13, %v1866_v4 }
 0x7ee   :  { %v1869_v45 = vrot.slane %v1868_v36, 4 }
 0x7f0   :  { %v1870_v46 = vadd.f32 %v1869_v45, %v1868_v36 }
 0x84d   :  { %v1594_v8 = vpop.xlane.xlu0 %1593 }
 0x84e   :  { %v1598_v28 = vsub.f32 %v1585_v22, %v1594_v8  ;;  %v1675_v22 = vrot.slane %v1674_v3, 4 }
 0x850   :  { %v1600_v12 = vmul.f32 1.442695, %v1598_v28 }
 0x851   :  { %v1597_v19 = vpop.xlane.xlu1 %1596  ;;  %v1788_v23 = vpop.xlane.xlu0 %1787 }
 0x852   :  { %3022 = vpow2.f32 %v1600_v12  ;;  %v1599_v60 = vsub.f32 %v1588_v53, %v1597_v19  ;;  %v1792_v32 = vsub.f32 %v1779_v26, %v1788_v23  ;;  %v1871_v53 = vrot.slane %v1870_v46, 2 }
 0x854   :  { %v1602_v42 = vmul.f32 1.442695, %v1599_v60  ;;  %v1794_v24 = vmul.f32 1.442695, %v1792_v32  ;;  %v1872_v54 = vadd.f32 %v1871_v53, %v1870_v46 }
 0x855   :  { %v1791_v27 = vpop.xlane.xlu1 %1790 }
 0x856   :  { %3024 = vpow2.f32 %v1602_v42  ;;  %v1793_v48 = vsub.f32 %v1782_v51, %v1791_v27  ;;  %v1676_v51 = vadd.f32 %v1675_v22, %v1674_v3  ;;  %v1873_v25 = vrot.slane %v1872_v54, 1 }
 0x857   :  { %3026 = vpow2.f32 %v1794_v24 }
 0x858   :  { %v1796_v5 = vmul.f32 1.442695, %v1793_v48  ;;  %v1677_v47 = vrot.slane %v1676_v51, 2  ;;  %v1874_v31 = vadd.f32 %v1873_v25, %v1872_v54 }
 0x85a   :  { %3028 = vpow2.f32 %v1796_v5  ;;  %v1678_v16 = vadd.f32 %v1677_v47, %v1676_v51 }
 0x85c   :  { %v1679_v40 = vrot.slane %v1678_v16, 1 }
 0x85e   :  { %v1680_v61 = vadd.f32 %v1679_v40, %v1678_v16 }
 0x85f   :  { %v3023_v50 = vpop.eup %3022 }
 0x860   :  { %v1604_v20 = vsel %vm679_vm1, %v3023_v50, 0.0  ;;  %3030 = vrcp.f32 %v1680_v61 }
 0x861   :  { %1605 = vadd.xlane.f32.xlu0 %v1604_v20  ;;  %3032 = vrcp.f32 %v1874_v31 }
 0x863   :  { %v3025_v0 = vpop.eup %3024 }
 0x864   :  { %v3027_v38 = vpop.eup %3026  ;;  %v1607_v37 = vsel %vm679_vm1, %v3025_v0, 0.0 }
 0x865   :  { %1608 = vadd.xlane.f32.xlu1 %v1607_v37  ;;  %v1798_v26 = vsel %vm679_vm1, %v3027_v38, 0.0 }
 0x866   :  { %1799 = vadd.xlane.f32.xlu0 %v1798_v26 }
 0x867   :  { %v3029_v14 = vpop.eup %3028 }
 0x868   :  { %v1801_v44 = vsel %vm679_vm1, %v3029_v14, 0.0 }
 0x869   :  { %1802 = vadd.xlane.f32.xlu1 %v1801_v44 }
 0x86d   :  { %v3031_v15 = vpop.eup %3030 }
 0x86e   :  { %v3033_v43 = vpop.eup %3032  ;;  %v1682_v57 = vmul.f32 %v3031_v15, %v3015_v29  ;;  %v1683_v39 = vmul.f32 %v3031_v15, %v3017_v52 }
 0x86f   :  { %v1876_v59 = vmul.f32 %v3033_v43, %v3019_v21  ;;  %v1877_v10 = vmul.f32 %v3033_v43, %v3021_v30 }
 0x870   :  { %v1684_v1 = vpack.c.bf16 %v1683_v39, %v1682_v57 }
 0x871   :  { %v1878_v63 = vpack.c.bf16 %v1877_v10, %v1876_v59 }
 0x893   :  { %1685 = vxpose.xlu0.c.b16.start.end [1/1] (short) (narrow) %v1684_v1, 16 }
 0x896   :  { %1879 = vxpose.xlu1.c.b16.start.end [1/1] (short) (narrow) %v1878_v63, 16 }
 0x8ea   :  { %v1606_v58 = vpop.xlane.xlu0 %1605 }
 0x8eb   :  { %3034 = vrcp.f32 %v1606_v58 }
 0x8ee   :  { %v1609_v62 = vpop.xlane.xlu1 %1608 }
 0x8ef   :  { %3036 = vrcp.f32 %v1609_v62  ;;  %v1800_v56 = vpop.xlane.xlu0 %1799 }
 0x8f2   :  { %v1803_v7 = vpop.xlane.xlu1 %1802 }
 0x8f3   :  { %3038 = vrcp.f32 %v1803_v7 }
 0x8f4   :  { %3040 = vrcp.f32 %v1800_v56 }
 0x8f5   :  { %v1693_v18 = vpop.trf.xlu0 }
 0x8f8   :  { %v1887_v2 = vpop.trf.xlu1  ;;  %v3035_v6 = vpop.eup %3034 }
 0x8f9   :  { %2809 = vmatmul.mubr.msk.bf16.vlgmr.msra.gmra.mxu1 %vm679_vm1, %v1887_v2  ;;  %v1612_v41 = vmul.f32 %v3035_v6, %v3023_v50 }
 0x8fc   :  { %v3037_v11 = vpop.eup %3036 }
 0x8fd   :  { %v1613_v33 = vmul.f32 %v3037_v11, %v3025_v0 }
 0x8ff   :  { %v1614_v17 = vpack.c.bf16 %v1613_v33, %v1612_v41 }
 0x900   :  { %v3039_v8 = vpop.eup %3038 }
 0x901   :  { %2785 = vmatmul.mubr.msk.bf16.vlgmr.msra.gmra.mxu0 %vm679_vm1, %v1614_v17  ;;  %v3041_v28 = vpop.eup %3040  ;;  %v1807_v12 = vmul.f32 %v3039_v8, %v3029_v14 }
 0x902   :  { %2789 = vmatpush3.bf16.msra.mxu0 %v3651_v49  ;;  %2790 = vmatprep.mubr.msk.bf16.mxu0 %vm3266_vm0, %v3265_v35  ;;  %v1806_v19 = vmul.f32 %v3041_v28, %v3027_v38 }
 0x903   :  { %2800 = vmatprep.subr.bf16.mxu0 %v3265_v35 }
 0x904   :  { %v1808_v23 = vpack.c.bf16 %v1807_v12, %v1806_v19 }
 0x909   :  { %2791 = vmatmul.mubr.msk.bf16.vlgmr.msra.gmra.mxu0 %vm679_vm1, %v1693_v18 }
 0x90a   :  { %2801 = vmatpush3.bf16.msra.mxu0 %v3644_v55  ;;  %2802 = vmatprep.mubr.msk.bf16.mxu0 %vm3266_vm0, %v3265_v35 }
 0x911   :  { %2803 = vmatmul.mubr.msk.bf16.vlgmr.msra.gmra.mxu0 %vm679_vm1, %v1808_v23 }
 0x9b9   :  { %v3686_v49 = vpop.f32.mrf.mxu1 }
 0x9ba   :  { %v3689_v60 = vmul.f32 0.70710677, %v3686_v49 }
 0x9bb   :  { %v2810_v32 = vpop.f32.mrf.mxu1 }
 0x9bc   :  { %v2309_v42 = vand.u32 2147483647, %v3689_v60  ;;  %vm2389_vm10 = vcmp.lt.f32.partialorder %v3689_v60, 0.0 }
 0x9bd   :  { %v3692_v24 = vpop.f32.mrf.mxu1 }
 0x9be   :  { %v2313_v27 = vmul.f32 0.3275911, %v2309_v42  ;;  %v3695_v55 = vmul.f32 0.70710677, %v3692_v24  ;;  %v2365_v34 = vmul.f32 %v2309_v42, %v2309_v42 }
 0x9bf   :  { %v2811_v35 = vpop.f32.mrf.mxu1 }
 0x9c0   :  { %v2317_v48 = vadd.f32 1.0, %v2313_v27  ;;  %v2311_v5 = vand.u32 2147483647, %v3695_v55  ;;  %v2369_v38 = vsub.f32 0.0, %v2365_v34  ;;  %vm2391_vm11 = vcmp.lt.f32.partialorder %v3695_v55, 0.0 }
 0x9c1   :  { %v3698_v29 = vpop.f32.mrf.mxu0 }
 0x9c2   :  { %3042 = vrcp.f32 %v2317_v48  ;;  %v2315_v52 = vmul.f32 0.3275911, %v2311_v5  ;;  %v3701_v21 = vmul.f32 0.70710677, %v3698_v29  ;;  %v2367_v26 = vmul.f32 %v2311_v5, %v2311_v5 }
 0x9c3   :  { %v2786_v30 = vpop.f32.mrf.mxu0  ;;  %v2374_v46 = vmul.f32 1.442695, %v2369_v38 }
 0x9c4   :  { %v2319_v9 = vadd.f32 1.0, %v2315_v52  ;;  %v1948_v50 = vand.u32 2147483647, %v3701_v21  ;;  %v2371_v53 = vsub.f32 0.0, %v2367_v26  ;;  %vm2028_vm12 = vcmp.lt.f32.partialorder %v3701_v21, 0.0 }
 0x9c5   :  { %v3704_v20 = vpop.f32.mrf.mxu0 }
 0x9c6   :  { %3044 = vrcp.f32 %v2319_v9  ;;  %v3707_v3 = vmul.f32 0.70710677, %v3704_v20  ;;  %v1952_v4 = vmul.f32 0.3275911, %v1948_v50  ;;  %v2004_v31 = vmul.f32 %v1948_v50, %v1948_v50 }
 0x9c7   :  { %v2787_v13 = vpop.f32.mrf.mxu0  ;;  %v2378_v10 = vmul.f32 1.442695, %v2371_v53 }
 0x9c8   :  { %v1950_v0 = vand.u32 2147483647, %v3707_v3  ;;  %v1956_v36 = vadd.f32 1.0, %v1952_v4  ;;  %v2008_v6 = vsub.f32 0.0, %v2004_v31  ;;  %vm2030_vm13 = vcmp.lt.f32.partialorder %v3707_v3, 0.0 }
 0x9c9   :  { %v3710_v37 = vpop.f32.mrf.mxu0 }
 0x9ca   :  { %v1954_v22 = vmul.f32 0.3275911, %v1950_v0  ;;  %v3713_v14 = vmul.f32 0.70710677, %v3710_v37  ;;  %3046 = vrcp.f32 %v1956_v36  ;;  %v2006_v43 = vmul.f32 %v1950_v0, %v1950_v0 }
 0x9cb   :  { %v2792_v44 = vpop.f32.mrf.mxu0  ;;  %v2013_v42 = vmul.f32 1.442695, %v2008_v6 }
 0x9cc   :  { %v1958_v45 = vadd.f32 1.0, %v1954_v22  ;;  %v2068_v51 = vand.u32 2147483647, %v3713_v14  ;;  %v2010_v56 = vsub.f32 0.0, %v2006_v43  ;;  %v3752_v22 = vmul.f32 0.5, %v3686_v49 }
 0x9cd   :  { %v3716_v47 = vpop.f32.mrf.mxu0  ;;  %vm2148_vm14 = vcmp.lt.f32.partialorder %v3713_v14, 0.0 }
 0x9ce   :  { %3048 = vrcp.f32 %v1958_v45  ;;  %v2072_v16 = vmul.f32 0.3275911, %v2068_v51  ;;  %v3721_v40 = vmul.f32 0.70710677, %v3716_v47  ;;  %v2124_v8 = vmul.f32 %v2068_v51, %v2068_v51 }
 0x9cf   :  { %v3718_v54 = vpop.eup %3042  ;;  %v2793_v25 = vpop.f32.mrf.mxu0  ;;  %3050 = vpow2.f32 %v2374_v46  ;;  %v2017_v48 = vmul.f32 1.442695, %v2010_v56 }
 0x9d0   :  { %v2329_v61 = vmul.f32 1.0614054, %v3718_v54  ;;  %v2076_v15 = vadd.f32 1.0, %v2072_v16  ;;  %v2070_v57 = vand.u32 2147483647, %v3721_v40  ;;  %v2128_v13 = vsub.f32 0.0, %v2124_v8 }
 0x9d1   :  { %v3725_v39 = vpop.f32.mrf.mxu0  ;;  %vm2150_vm15 = vcmp.lt.f32.partialorder %v3721_v40, 0.0 }
 0x9d2   :  { %v2333_v59 = vadd.f32 -1.4531521, %v2329_v61  ;;  %3052 = vrcp.f32 %v2076_v15  ;;  %v2074_v63 = vmul.f32 0.3275911, %v2070_v57  ;;  %v3730_v58 = vmul.f32 0.70710677, %v3725_v39 }
 0x9d3   :  { %v3727_v1 = vpop.eup %3044  ;;  %v2804_v62 = vpop.f32.mrf.mxu0  ;;  %3054 = vpow2.f32 %v2378_v10  ;;  %v2126_v5 = vmul.f32 %v2070_v57, %v2070_v57  ;;  %v2133_v31 = vmul.f32 1.442695, %v2128_v13 }
 0x9d4   :  { %v2337_v7 = vmul.f32 %v3718_v54, %v2333_v59  ;;  %v2331_v2 = vmul.f32 1.0614054, %v3727_v1  ;;  %v2078_v11 = vadd.f32 1.0, %v2074_v63  ;;  %v2188_v41 = vand.u32 2147483647, %v3730_v58 }
 0x9d5   :  { %v3735_v33 = vpop.f32.mrf.mxu0  ;;  %v2130_v45 = vsub.f32 0.0, %v2126_v5  ;;  %v3763_v63 = vmul.f32 0.5, %v3692_v24  ;;  %vm2268_vm0 = vcmp.lt.f32.partialorder %v3730_v58, 0.0 }
 0x9d6   :  { %v2341_v17 = vadd.f32 1.4214138, %v2337_v7  ;;  %v2335_v18 = vadd.f32 -1.4531521, %v2331_v2  ;;  %3056 = vrcp.f32 %v2078_v11  ;;  %v2192_v28 = vmul.f32 0.3275911, %v2188_v41 }
 0x9d7   :  { %v2805_v12 = vpop.f32.mrf.mxu0  ;;  %v3737_v19 = vpop.eup %3046  ;;  %v3742_v27 = vmul.f32 0.70710677, %v3735_v33  ;;  %v2244_v15 = vmul.f32 %v2188_v41, %v2188_v41  ;;  %v2137_v7 = vmul.f32 1.442695, %v2130_v45 }
 0x9d8   :  { %v2345_v23 = vmul.f32 %v3718_v54, %v2341_v17  ;;  %v2339_v32 = vmul.f32 %v3727_v1, %v2335_v18  ;;  %v1968_v35 = vmul.f32 1.0614054, %v3737_v19  ;;  %v2196_v52 = vadd.f32 1.0, %v2192_v28 }
 0x9d9   :  { %v2190_v34 = vand.u32 2147483647, %v3742_v27  ;;  %v2248_v17 = vsub.f32 0.0, %v2244_v15  ;;  %vm2270_vm1 = vcmp.lt.f32.partialorder %v3742_v27, 0.0 }
 0x9da   :  { %v2349_v30 = vadd.f32 -0.28449672, %v2345_v23  ;;  %v2343_v9 = vadd.f32 1.4214138, %v2339_v32  ;;  %v1972_v4 = vadd.f32 -1.4531521, %v1968_v35  ;;  %3058 = vrcp.f32 %v2196_v52 }
 0x9db   :  { %v3746_v50 = vpop.eup %3048  ;;  %v2194_v26 = vmul.f32 0.3275911, %v2190_v34  ;;  %3060 = vpow2.f32 %v2013_v42  ;;  %v3773_v23 = vmul.f32 0.5, %v3698_v29 }
 0x9dc   :  { %v2353_v0 = vmul.f32 %v3718_v54, %v2349_v30  ;;  %v2347_v38 = vmul.f32 %v3727_v1, %v2343_v9  ;;  %v1970_v36 = vmul.f32 1.0614054, %v3746_v50  ;;  %v1976_v44 = vmul.f32 %v3737_v19, %v1972_v4  ;;  %v3051_v51 = vpop.eup %3050 }
 0x9dd   :  { %3062 = vpow2.f32 %v2017_v48  ;;  %v2198_v43 = vadd.f32 1.0, %v2194_v26  ;;  %v2253_v4 = vmul.f32 1.442695, %v2248_v17 }
 0x9de   :  { %v2357_v46 = vadd.f32 0.2548296, %v2353_v0  ;;  %v2351_v53 = vadd.f32 -0.28449672, %v2347_v38  ;;  %v1974_v16 = vadd.f32 -1.4531521, %v1970_v36 }
 0x9df   :  { %v3755_v25 = vpop.eup %3052  ;;  %v1980_v61 = vadd.f32 1.4214138, %v1976_v44  ;;  %3064 = vrcp.f32 %v2198_v43 }
 0x9e0   :  { %v2361_v49 = vmul.f32 %v3718_v54, %v2357_v46  ;;  %v2355_v57 = vmul.f32 %v3727_v1, %v2351_v53  ;;  %v1978_v59 = vmul.f32 %v3746_v50, %v1974_v16  ;;  %v2088_v10 = vmul.f32 1.0614054, %v3755_v25  ;;  %v3055_v41 = vpop.eup %3054 }
 0x9e1   :  { %v1984_v62 = vmul.f32 %v3737_v19, %v1980_v61  ;;  %3066 = vpow2.f32 %v2133_v31  ;;  %v1942_v53 = vmul.f32 0.5, %v3704_v20 }
 0x9e2   :  { %v2381_v2 = vmul.f32 %v3051_v51, %v2361_v49  ;;  %v2359_v6 = vadd.f32 0.2548296, %v2355_v57  ;;  %v1982_v56 = vadd.f32 1.4214138, %v1978_v59  ;;  %v2092_v11 = vadd.f32 -1.4531521, %v2088_v10 }
 0x9e3   :  { %v1988_v54 = vadd.f32 -0.28449672, %v1984_v62  ;;  %v3767_v18 = vpop.eup %3056  ;;  %3068 = vpow2.f32 %v2137_v7  ;;  %v3098_v62 = vld [vmem:[#allocation5 + $0x28] sm:$0xff] }
 0x9e4   :  { %v2385_v8 = vsub.f32 1.0, %v2381_v2  ;;  %v2363_v24 = vmul.f32 %v3727_v1, %v2359_v6  ;;  %v1986_v28 = vmul.f32 %v3746_v50, %v1982_v56  ;;  %v2096_v12 = vmul.f32 %v3755_v25, %v2092_v11 }
 0x9e5   :  { %v1992_v32 = vmul.f32 %v3737_v19, %v1988_v54  ;;  %v2090_v42 = vmul.f32 1.0614054, %v3767_v18  ;;  %v2246_v1 = vmul.f32 %v2190_v34, %v2190_v34  ;;  %3070 = vpow2.f32 %v2253_v4 }
 0x9e6   :  { %v2393_v35 = vsub.f32 0.0, %v2385_v8  ;;  %v2383_v48 = vmul.f32 %v3055_v41, %v2363_v24  ;;  %v1990_v5 = vadd.f32 -0.28449672, %v1986_v28  ;;  %v2100_v52 = vadd.f32 1.4214138, %v2096_v12 }
 0x9e7   :  { %v1996_v30 = vadd.f32 0.2548296, %v1992_v32  ;;  %v2094_v9 = vadd.f32 -1.4531521, %v2090_v42  ;;  %v3777_v13 = vpop.eup %3058  ;;  %v2250_v10 = vsub.f32 0.0, %v2246_v1  ;;  %v3099_v32 = vld [vmem:[#allocation5 + $0x38] sm:$0xff] }
 0x9e8   :  { %v2397_v0 = vsel %vm2389_vm10, %v2393_v35, %v2385_v8  ;;  %v2387_v29 = vsub.f32 1.0, %v2383_v48  ;;  %v1994_v38 = vmul.f32 %v3746_v50, %v1990_v5  ;;  %v2104_v36 = vmul.f32 %v3755_v25, %v2100_v52  ;;  %v3061_v34 = vpop.eup %3060 }
 0x9e9   :  { %v2401_v26 = vadd.f32 1.0, %v2397_v0  ;;  %v2000_v44 = vmul.f32 %v3737_v19, %v1996_v30  ;;  %v2098_v45 = vmul.f32 %v3767_v18, %v2094_v9  ;;  %v2208_v51 = vmul.f32 1.0614054, %v3777_v13 }
 0x9ea   :  { %v2395_v46 = vsub.f32 0.0, %v2387_v29  ;;  %v1998_v60 = vadd.f32 0.2548296, %v1994_v38  ;;  %v2108_v16 = vadd.f32 -0.28449672, %v2104_v36  ;;  %v3063_v61 = vpop.eup %3062 }
 0x9eb   :  { %v2405_v31 = vmul.f32 %v2401_v26, %v3752_v22  ;;  %v2020_v15 = vmul.f32 %v3061_v34, %v2000_v44  ;;  %v2102_v43 = vadd.f32 1.4214138, %v2098_v45  ;;  %v2212_v49 = vadd.f32 -1.4531521, %v2208_v51  ;;  %v3100_v45 = vld [vmem:[#allocation2 + $0x8] sm:$0xff] }
 0x9ec   :  { %v2399_v57 = vsel %vm2391_vm11, %v2395_v46, %v2387_v29  ;;  %v2002_v19 = vmul.f32 %v3746_v50, %v1998_v60  ;;  %v2112_v59 = vmul.f32 %v3755_v25, %v2108_v16  ;;  %v3794_v56 = vpop.eup %3064  ;;  %v2257_v5 = vmul.f32 1.442695, %v2250_v10 }
 0x9ed   :  { %v2409_v7 = vadd.f32 %v3098_v62, %v2405_v31  ;;  %v2403_v2 = vadd.f32 1.0, %v2399_v57  ;;  %v2024_v20 = vsub.f32 1.0, %v2020_v15  ;;  %v2106_v6 = vmul.f32 %v3767_v18, %v2102_v43  ;;  %v3101_v15 = vld [vmem:[#allocation2 + $0x18] sm:$0xff] }
 0x9ee   :  { %v2022_v22 = vmul.f32 %v3063_v61, %v2002_v19  ;;  %v2116_v11 = vadd.f32 0.2548296, %v2112_v59  ;;  %v2216_v41 = vmul.f32 %v3777_v13, %v2212_v49  ;;  %v3067_v17 = vpop.eup %3066  ;;  %v2210_v12 = vmul.f32 1.0614054, %v3794_v56 }
 0x9ef   :  { %3072 = vtanh.f32 %v2409_v7  ;;  %v2407_v55 = vmul.f32 %v2403_v2, %v3763_v63  ;;  %v2032_v50 = vsub.f32 0.0, %v2024_v20  ;;  %v2110_v54 = vadd.f32 -0.28449672, %v2106_v6 }
 0x9f0   :  { %v2026_v8 = vsub.f32 1.0, %v2022_v22  ;;  %v2120_v24 = vmul.f32 %v3755_v25, %v2116_v11  ;;  %v2220_v28 = vadd.f32 1.4214138, %v2216_v41  ;;  %v3069_v52 = vpop.eup %3068  ;;  %v2214_v1 = vadd.f32 -1.4531521, %v2210_v12 }
 0x9f1   :  { %v2411_v42 = vadd.f32 %v3099_v32, %v2407_v55  ;;  %v2036_v35 = vsel %vm2028_vm12, %v2032_v50, %v2024_v20  ;;  %v2114_v48 = vmul.f32 %v3767_v18, %v2110_v54  ;;  %v2062_v22 = vmul.f32 0.5, %v3716_v47 }
 0x9f2   :  { %v2040_v30 = vadd.f32 1.0, %v2036_v35  ;;  %v2034_v63 = vsub.f32 0.0, %v2026_v8  ;;  %v2140_v9 = vmul.f32 %v3067_v17, %v2120_v24  ;;  %v2224_v4 = vmul.f32 %v3777_v13, %v2220_v28  ;;  %v3071_v59 = vpop.eup %3070 }
 0x9f3   :  { %3074 = vtanh.f32 %v2411_v42  ;;  %v2118_v25 = vadd.f32 0.2548296, %v2114_v48  ;;  %v2218_v44 = vmul.f32 %v3794_v56, %v2214_v1  ;;  %v2180_v12 = vmul.f32 0.5, %v3725_v39 }
 0x9f4   :  { %v2044_v0 = vmul.f32 %v2040_v30, %v3773_v23  ;;  %v2038_v29 = vsel %vm2030_vm13, %v2034_v63, %v2026_v8  ;;  %v2144_v38 = vsub.f32 1.0, %v2140_v9  ;;  %v2228_v21 = vadd.f32 -0.28449672, %v2224_v4  ;;  %v3103_v8 = vld [vmem:[#allocation5 + $0x18] sm:$0xff] }
 0x9f5   :  { %v2042_v36 = vadd.f32 1.0, %v2038_v29  ;;  %v2122_v26 = vmul.f32 %v3767_v18, %v2118_v25  ;;  %3076 = vpow2.f32 %v2257_v5  ;;  %v2222_v16 = vadd.f32 1.4214138, %v2218_v44  ;;  %v3104_v5 = vld [vmem:[#allocation2 + $0x28] sm:$0xff]  ;;  %v3105_v25 = vld [vmem:[#allocation2 + $0x38] sm:$0xff] }
 0x9f6   :  { %v2048_v51 = vadd.f32 %v3100_v45, %v2044_v0  ;;  %v2152_v34 = vsub.f32 0.0, %v2144_v38  ;;  %v2232_v46 = vmul.f32 %v3777_v13, %v2228_v21  ;;  %v2060_v23 = vmul.f32 0.5, %v3710_v37  ;;  %v3102_v37 = vld [vmem:[#allocation5 + $0x8] sm:$0xff] }
 0x9f7   :  { %v2046_v60 = vmul.f32 %v2042_v36, %v1942_v53  ;;  %v2142_v3 = vmul.f32 %v3069_v52, %v2122_v26  ;;  %v2226_v57 = vmul.f32 %v3794_v56, %v2222_v16 }
 0x9f8   :  { %3078 = vtanh.f32 %v2048_v51  ;;  %v2156_v61 = vsel %vm2148_vm14, %v2152_v34, %v2144_v38  ;;  %v2236_v31 = vadd.f32 0.2548296, %v2232_v46 }
 0x9f9   :  { %v2050_v18 = vadd.f32 %v3101_v15, %v2046_v60  ;;  %v2160_v43 = vadd.f32 1.0, %v2156_v61  ;;  %v2146_v49 = vsub.f32 1.0, %v2142_v3  ;;  %v2230_v14 = vadd.f32 -0.28449672, %v2226_v57 }
 0x9fa   :  { %v2240_v19 = vmul.f32 %v3777_v13, %v2236_v31 }
 0x9fb   :  { %3080 = vtanh.f32 %v2050_v18  ;;  %v2164_v53 = vmul.f32 %v2160_v43, %v2060_v23  ;;  %v2154_v10 = vsub.f32 0.0, %v2146_v49  ;;  %v2234_v6 = vmul.f32 %v3794_v56, %v2230_v14 }
 0x9fc   :  { %v3073_v62 = vpop.eup %3072  ;;  %v2260_v7 = vmul.f32 %v3071_v59, %v2240_v19 }
 0x9fd   :  { %2418 = vst [vmem:[#allocation12 + $0x28] sm:$0xff] %v3073_v62  ;;  %v2168_v2 = vadd.f32 %v3102_v37, %v2164_v53  ;;  %v2158_v20 = vsel %vm2150_vm15, %v2154_v10, %v2146_v49  ;;  %v2238_v13 = vadd.f32 0.2548296, %v2234_v6 }
 0x9fe   :  { %v2162_v11 = vadd.f32 1.0, %v2158_v20  ;;  %v2264_v41 = vsub.f32 1.0, %v2260_v7 }
 0x9ff   :  { %3082 = vtanh.f32 %v2168_v2  ;;  %v2242_v40 = vmul.f32 %v3794_v56, %v2238_v13  ;;  %v2182_v56 = vmul.f32 0.5, %v3735_v33 }
 0xa00   :  { %v3075_v55 = vpop.eup %3074  ;;  %v2166_v50 = vmul.f32 %v2162_v11, %v2062_v22  ;;  %v2272_v54 = vsub.f32 0.0, %v2264_v41 }
 0xa01   :  { %2420 = vst [vmem:[#allocation12 + $0x38] sm:$0xff] %v3075_v55 }
 0xa02   :  { %v3077_v17 = vpop.eup %3076  ;;  %v2170_v24 = vadd.f32 %v3103_v8, %v2166_v50  ;;  %v2276_v28 = vsel %vm2268_vm0, %v2272_v54, %v2264_v41 }
 0xa03   :  { %v2280_v32 = vadd.f32 1.0, %v2276_v28  ;;  %v2262_v47 = vmul.f32 %v3077_v17, %v2242_v40 }
 0xa04   :  { %3084 = vtanh.f32 %v2170_v24 }
 0xa05   :  { %v3079_v42 = vpop.eup %3078  ;;  %v2284_v35 = vmul.f32 %v2280_v32, %v2180_v12  ;;  %v2266_v48 = vsub.f32 1.0, %v2262_v47 }
 0xa06   :  { %2056 = vst [vmem:[#allocation11 + $0x8] sm:$0xff] %v3079_v42 }
 0xa07   :  { %v2288_v52 = vadd.f32 %v3104_v5, %v2284_v35  ;;  %v2274_v30 = vsub.f32 0.0, %v2266_v48 }
 0xa08   :  { %v3081_v63 = vpop.eup %3080 }
 0xa09   :  { %2058 = vst [vmem:[#allocation11 + $0x18] sm:$0xff] %v3081_v63  ;;  %3086 = vtanh.f32 %v2288_v52  ;;  %v2278_v58 = vsel %vm2270_vm1, %v2274_v30, %v2266_v48 }
 0xa0a   :  { %v2282_v9 = vadd.f32 1.0, %v2278_v58 }
 0xa0c   :  { %v3083_v39 = vpop.eup %3082  ;;  %v2286_v4 = vmul.f32 %v2282_v9, %v2182_v56 }
 0xa0d   :  { %2176 = vst [vmem:[#allocation12 + $0x8] sm:$0xff] %v3083_v39 }
 0xa0e   :  { %v2290_v1 = vadd.f32 %v3105_v25, %v2286_v4 }
 0xa10   :  { %3088 = vtanh.f32 %v2290_v1 }
 0xa11   :  { %v3085_v0 = vpop.eup %3084 }
 0xa12   :  { %2178 = vst [vmem:[#allocation12 + $0x18] sm:$0xff] %v3085_v0 }
 0xa13   :  { %3217 = shalt.err (!%p3214_p1)
}
 0xa14   :  { %2444 = dma.vmem_to_hbm [thread:$0]  %s2439_s4, 1024, %s3839_s6, [#allocation13], %s3257_s24, %s3257_s24, %s3258_s25  }
 0xa15   :  { %s3268_s28 = smov [#allocation11]  }
 0xa16   :  { %v3087_v33 = vpop.eup %3086  ;;  %s2426_s29 = sshll.u32 %s3268_s28, 4  ;;  %s2427_s29 = int_to_ptr.vmem [resolvable:$true] %s2426_s29 }
 0xa17   :  { %2297 = vst [vmem:[#allocation11 + $0x28] sm:$0xff] %v3087_v33  ;;  %s3226_s30 = scalar_lea.vmem %s2427_s29, 1024  ;;  %p3231_p3 = scmp.lt.s32.totalorder %s2427_s29, %s2427_s29 }
 0xa18   :  { %p3227_p2 = scmp.ne.s32.totalorder %s2427_s29, %s3226_s30  ;;  %p3232_p4 = scmp.lt.s32.totalorder %s3226_s30, %s3226_s30 }
 0xa1a   :  { %p3233_p5 = por %p3232_p4, %p3231_p3 }
 0xa1c   :  { %p3234_p6 = pnand %p3233_p5, %p3227_p2 }
 0xa1d   :  { %v3089_v27 = vpop.eup %3088 }
 0xa1e   :  { %2299 = vst [vmem:[#allocation11 + $0x38] sm:$0xff] %v3089_v27 }
 0xa1f   :  { %3237 = shalt.err (!%p3234_p6)
}
 0xa20   :  { %2432 = dma.vmem_to_hbm [thread:$0]  %s2427_s29, 1024, %s3838_s5, [#allocation4], %s3257_s24, %s3257_s24, %s3258_s25  }
 0xa21   :  { %3252 = dma.done.wait [#allocation4], 1024  }
 0xa22   :  { %3253 = vsyncadd [#allocation4], 4294966272 }
 0xa23   :  { %3254 = dma.done.wait [#allocation13], 1024  }
 0xa24   :  { %3255 = vsyncadd [#allocation13], 4294966272 }
 0xa25   :  { %2451 = vsyncpa [#allocation3], 1 }
 0xa26   :  { %2452 = vsyncpa [#allocation6], 1 }
 0xa27   :  { %2453 = vsyncpa [#allocation9], 1 }
 0xa28   :  { %2454 = vsyncpa [#allocation4], 1 }
 0xa29   :  { %2455 = vsyncpa [#allocation13], 1 }

</bundles_post_ra>
